<compile_context>
chip_gen: v5e
topology: v5e:2x2
jax: 0.10.0
libtpu: 0.0.40
codegen_flags: <defaults>
</compile_context>

<pallas_src>
import functools

import jax
import jax.numpy as jnp
from jax.experimental import pallas as pl
from jax.experimental.pallas import tpu as pltpu


_SQRT_HALF = 0.7071067811865476


def _round_up(x, m):
    return ((x + m - 1) // m) * m


def _vmem_limit(estimated_bytes):
    # At/above the default scoped limit, but below physical VMEM on every
    # generation (v7x has 64 MiB per TensorCore).
    return int(min(64 * 1024 * 1024, max(32 * 1024 * 1024, 2 * estimated_bytes)))


def _layernorm(x, gamma, beta, eps=1e-5):
    mu = jnp.mean(x, axis=-1, keepdims=True)
    xc = x - mu
    var = jnp.mean(xc * xc, axis=-1, keepdims=True)
    return xc * jax.lax.rsqrt(var + eps) * gamma + beta


def _gelu(x, approximate):
    if approximate:
        # tanh approximation routes the transcendental to the EUP slot (v5e win).
        return jax.nn.gelu(x, approximate=True)
    # exact erf formulation matches torch.nn.GELU() default.
    return 0.5 * x * (1.0 + jax.lax.erf(x * _SQRT_HALF))


# ----------------------------------------------------------------------------
# Kernel 1: LN_q / LN_k + multi-head cross attention + out proj + residual.
# ----------------------------------------------------------------------------
def _cross_attn_kernel(q_ref, kv_ref, gq_ref, bq_ref, gk_ref, bk_ref,
                       wq_ref, wk_ref, wv_ref, wo_ref, bo_ref, o_ref,
                       *, num_heads, scale, compute_dtype):
    xq = q_ref[0].astype(jnp.float32)        # (N, C)  residual + LN input
    xk = kv_ref[0].astype(jnp.float32)       # (S, C)

    qn = _layernorm(xq, gq_ref[...], bq_ref[...]).astype(compute_dtype)
    kn = _layernorm(xk, gk_ref[...], bk_ref[...]).astype(compute_dtype)

    n_q, c = xq.shape
    hd = c // num_heads

    acc = jnp.zeros((n_q, c), dtype=jnp.float32)
    # Unrolled head loop; all slicing is done on the weight Refs (VMEM loads),
    # activations only ever feed 2-D matmuls.
    for h in range(num_heads):
        lo, hi = h * hd, (h + 1) * hd
        q_h = jnp.dot(qn, wq_ref[:, lo:hi], preferred_element_type=jnp.float32)  # (N, hd)
        k_h = jnp.dot(kn, wk_ref[:, lo:hi], preferred_element_type=jnp.float32)  # (S, hd)
        v_h = jnp.dot(kn, wv_ref[:, lo:hi], preferred_element_type=jnp.float32)  # (S, hd)

        # q @ k^T without materializing a transpose.
        logits = jax.lax.dot_general(
            q_h.astype(compute_dtype), k_h.astype(compute_dtype),
            dimension_numbers=(((1,), (1,)), ((), ())),
            preferred_element_type=jnp.float32) * scale                           # (N, S)

        logits = logits - jnp.max(logits, axis=-1, keepdims=True)
        p = jnp.exp(logits)
        p = p / jnp.sum(p, axis=-1, keepdims=True)                                # softmax
        # attn_drop p=0.0 -> identity

        ctx_h = jnp.dot(p.astype(compute_dtype), v_h.astype(compute_dtype),
                        preferred_element_type=jnp.float32)                       # (N, hd)
        # Fold the per-head slice of the output projection directly into the
        # accumulator: concat_h(ctx_h) @ Wo == sum_h ctx_h @ Wo[h*hd:(h+1)*hd].
        acc = acc + jnp.dot(ctx_h.astype(compute_dtype), wo_ref[lo:hi, :],
                            preferred_element_type=jnp.float32)                   # (N, C)

    # proj bias + residual (proj_drop / drop_path p=0.0 -> identity)
    o_ref[0] = (xq + acc + bo_ref[...]).astype(o_ref.dtype)


def _attention_residual(query, key_inp, params, *, num_heads, compute_dtype):
    B, N, C = query.shape
    S = key_inp.shape[1]
    hd = C // num_heads
    scale = float(hd) ** -0.5
    wdt = jnp.dtype(compute_dtype)

    wq = params["wq"].astype(compute_dtype)
    wk = params["wk"].astype(compute_dtype)
    wv = params["wv"].astype(compute_dtype)
    wo = params["wo"].astype(compute_dtype)
    bo = params["bo"].reshape(1, C).astype(jnp.float32)
    gq = params["ln_q_g"].reshape(1, C).astype(jnp.float32)
    bq = params["ln_q_b"].reshape(1, C).astype(jnp.float32)
    gk = params["ln_k_g"].reshape(1, C).astype(jnp.float32)
    bk = params["ln_k_b"].reshape(1, C).astype(jnp.float32)

    # Rough double-buffered working-set estimate for the scoped VMEM budget.
    est = (2 * ((2 * N * C + S * C) * query.dtype.itemsize
                + 4 * C * C * wdt.itemsize + 5 * C * 4)
           + 4 * (N * C + 2 * S * C + N * S) * 4)

    kernel = functools.partial(_cross_attn_kernel, num_heads=num_heads,
                               scale=scale, compute_dtype=compute_dtype)
    const2 = lambda b: (0, 0)
    per_b = lambda b: (b, 0, 0)

    out = pl.pallas_call(
        kernel,
        out_shape=jax.ShapeDtypeStruct((B, N, C), query.dtype),
        grid_spec=pltpu.PrefetchScalarGridSpec(
            num_scalar_prefetch=0,
            grid=(B,),
            in_specs=[
                pl.BlockSpec((1, N, C), per_b),     # query
                pl.BlockSpec((1, S, C), per_b),     # key/value source
                pl.BlockSpec((1, C), const2),       # LN_q gamma
                pl.BlockSpec((1, C), const2),       # LN_q beta
                pl.BlockSpec((1, C), const2),       # LN_k gamma
                pl.BlockSpec((1, C), const2),       # LN_k beta
                pl.BlockSpec((C, C), const2),       # Wq
                pl.BlockSpec((C, C), const2),       # Wk
                pl.BlockSpec((C, C), const2),       # Wv
                pl.BlockSpec((C, C), const2),       # Wo (proj)
                pl.BlockSpec((1, C), const2),       # proj bias
            ],
            out_specs=pl.BlockSpec((1, N, C), per_b),
        ),
        compiler_params=pltpu.CompilerParams(
            dimension_semantics=("parallel",),
            vmem_limit_bytes=_vmem_limit(est),
        ),
        cost_estimate=pl.CostEstimate(
            flops=int(B * (4 * N * C * C + 4 * S * C * C + 4 * N * S * C)),
            transcendentals=int(B * num_heads * N * S),
            bytes_accessed=int((2 * B * N * C + B * S * C) * query.dtype.itemsize
                               + 4 * C * C * wdt.itemsize),
        ),
    )(query, key_inp, gq, bq, gk, bk, wq, wk, wv, wo, bo)
    return out


# ----------------------------------------------------------------------------
# Kernel 2: LN_2 + fc1 + GELU + fc2 + residual, tiled over flattened tokens.
# ----------------------------------------------------------------------------
def _mlp_kernel(x_ref, g_ref, b_ref, w1_ref, b1_ref, w2_ref, b2_ref, o_ref,
                *, compute_dtype, approximate_gelu):
    x = x_ref[...].astype(jnp.float32)                                   # (tm, C)
    h = _layernorm(x, g_ref[...], b_ref[...]).astype(compute_dtype)
    a = jnp.dot(h, w1_ref[...], preferred_element_type=jnp.float32) + b1_ref[...]
    a = _gelu(a, approximate_gelu)                                       # drop p=0 -> id
    y = jnp.dot(a.astype(compute_dtype), w2_ref[...],
                preferred_element_type=jnp.float32) + b2_ref[...]
    o_ref[...] = (x + y).astype(o_ref.dtype)                             # residual


def _mlp_residual(x, params, *, compute_dtype, tm, approximate_gelu):
    B, N, C = x.shape
    Dh = params["w1"].shape[1]
    M = B * N
    wdt = jnp.dtype(compute_dtype)

    # Large token tile (feedback), clamped for tiny inputs, padded instead of
    # asserting divisibility.  Keep tm a multiple of 8 (fp32 sublane quantum).
    tm_eff = _round_up(min(tm, M), 8)
    Mp = _round_up(M, tm_eff)
    x2 = x.reshape(M, C)
    if Mp != M:
        x2 = jnp.pad(x2, ((0, Mp - M), (0, 0)))

    w1 = params["w1"].astype(compute_dtype)
    w2 = params["w2"].astype(compute_dtype)
    b1 = params["b1"].reshape(1, Dh).astype(jnp.float32)
    b2 = params["b2"].reshape(1, C).astype(jnp.float32)
    g2 = params["ln2_g"].reshape(1, C).astype(jnp.float32)
    be2 = params["ln2_b"].reshape(1, C).astype(jnp.float32)

    est = (2 * (2 * tm_eff * C * x.dtype.itemsize
                + 2 * C * Dh * wdt.itemsize
                + (3 * C + Dh) * 4)
           + 2 * tm_eff * Dh * 4 + 2 * tm_eff * C * 4)

    kernel = functools.partial(_mlp_kernel, compute_dtype=compute_dtype,
                               approximate_gelu=approximate_gelu)
    const = lambda i: (0, 0)

    out = pl.pallas_call(
        kernel,
        out_shape=jax.ShapeDtypeStruct((Mp, C), x.dtype),
        grid_spec=pltpu.PrefetchScalarGridSpec(
            num_scalar_prefetch=0,
            grid=(Mp // tm_eff,),
            in_specs=[
                pl.BlockSpec((tm_eff, C), lambda i: (i, 0)),  # x tile
                pl.BlockSpec((1, C), const),                  # LN2 gamma
                pl.BlockSpec((1, C), const),                  # LN2 beta
                pl.BlockSpec((C, Dh), const),                 # fc1 weight
                pl.BlockSpec((1, Dh), const),                 # fc1 bias
                pl.BlockSpec((Dh, C), const),                 # fc2 weight
                pl.BlockSpec((1, C), const),                  # fc2 bias
            ],
            out_specs=pl.BlockSpec((tm_eff, C), lambda i: (i, 0)),
        ),
        compiler_params=pltpu.CompilerParams(
            dimension_semantics=("parallel",),
            vmem_limit_bytes=_vmem_limit(est),
        ),
        cost_estimate=pl.CostEstimate(
            flops=int(4 * Mp * C * Dh),
            transcendentals=int(Mp * Dh),
            bytes_accessed=int(2 * Mp * C * x.dtype.itemsize
                               + 2 * C * Dh * wdt.itemsize),
        ),
    )(x2, g2, be2, w1, b1, w2, b2)
    return out[:M].reshape(B, N, C)


# ----------------------------------------------------------------------------
# Full block forward.
# ----------------------------------------------------------------------------
def cross_attn_block_forward(query, key_inp, params, *, num_heads,
                             compute_dtype=jnp.float32, tm=256,
                             approximate_gelu=False):
    """CrossAttnBlock forward: pre-norm, drop=attn_drop=drop_path=0 (eval)."""
    # TODO(synk): optional attention `mask` argument not implemented
    # (this is the mask=None path of the PyTorch forward).
    x = _attention_residual(query, key_inp, params, num_heads=num_heads,
                            compute_dtype=compute_dtype)
    x = _mlp_residual(x, params, compute_dtype=compute_dtype, tm=tm,
                      approximate_gelu=approximate_gelu)
    return x


# ----------------------------------------------------------------------------
# Pure-JAX reference (mirrors the PyTorch module, mask=None, drops=0).
# ----------------------------------------------------------------------------
def reference_cross_attn_block(query, key_inp, params, *, num_heads):
    P = jax.lax.Precision.HIGHEST

    def ln(x, g, b, eps=1e-5):
        mu = jnp.mean(x, axis=-1, keepdims=True)
        xc = x - mu
        var = jnp.mean(xc * xc, axis=-1, keepdims=True)
        return xc * jax.lax.rsqrt(var + eps) * g + b

    B, N, C = query.shape
    S = key_inp.shape[1]
    hd = C // num_heads
    scale = float(hd) ** -0.5

    qn = ln(query, params["ln_q_g"], params["ln_q_b"])
    kn = ln(key_inp, params["ln_k_g"], params["ln_k_b"])
    q = jnp.dot(qn, params["wq"], precision=P)
    k = jnp.dot(kn, params["wk"], precision=P)
    v = jnp.dot(kn, params["wv"], precision=P)
    qh = q.reshape(B, N, num_heads, hd).transpose(0, 2, 1, 3)
    kh = k.reshape(B, S, num_heads, hd).transpose(0, 2, 1, 3)
    vh = v.reshape(B, S, num_heads, hd).transpose(0, 2, 1, 3)
    attn = jax.nn.softmax(
        jnp.einsum("bhnd,bhsd->bhns", qh, kh, precision=P) * scale, axis=-1)
    ctx = jnp.einsum("bhns,bhsd->bhnd", attn, vh, precision=P)
    ctx = ctx.transpose(0, 2, 1, 3).reshape(B, N, C)
    x = query + (jnp.dot(ctx, params["wo"], precision=P) + params["bo"])

    h = ln(x, params["ln2_g"], params["ln2_b"])
    h = jnp.dot(h, params["w1"], precision=P) + params["b1"]
    h = 0.5 * h * (1.0 + jax.lax.erf(h * _SQRT_HALF))
    x = x + (jnp.dot(h, params["w2"], precision=P) + params["b2"])
    return x


if __name__ == "__main__":
    # Small shapes consistent with the module: batch=2, query seq=8,
    # key seq=16, dim=32, num_heads=4, mlp_hidden = 4*dim = 128.
    B, N, S = 2, 8, 16
    dim, num_heads = 32, 4
    hidden = int(dim * 4.0)
    f32 = jnp.float32

    rng = jax.random.PRNGKey(0)
    ks = jax.random.split(rng, 16)

    query = jax.random.normal(ks[0], (B, N, dim), f32)
    key_inp = jax.random.normal(ks[1], (B, S, dim), f32)

    params = dict(
        ln_q_g=1.0 + 0.1 * jax.random.normal(ks[2], (dim,), f32),
        ln_q_b=0.05 * jax.random.normal(ks[3], (dim,), f32),
        ln_k_g=1.0 + 0.1 * jax.random.normal(ks[4], (dim,), f32),
        ln_k_b=0.05 * jax.random.normal(ks[5], (dim,), f32),
        wq=0.05 * jax.random.normal(ks[6], (dim, dim), f32),
        wk=0.05 * jax.random.normal(ks[7], (dim, dim), f32),
        wv=0.05 * jax.random.normal(ks[8], (dim, dim), f32),
        wo=0.05 * jax.random.normal(ks[9], (dim, dim), f32),
        bo=0.01 * jax.random.normal(ks[10], (dim,), f32),
        ln2_g=1.0 + 0.1 * jax.random.normal(ks[11], (dim,), f32),
        ln2_b=0.05 * jax.random.normal(ks[12], (dim,), f32),
        w1=0.05 * jax.random.normal(ks[13], (dim, hidden), f32),
        b1=0.01 * jax.random.normal(ks[14], (hidden,), f32),
        w2=0.05 * jax.random.normal(ks[15], (hidden, dim), f32),
        b2=jnp.zeros((dim,), f32),
    )

    y_ref = reference_cross_attn_block(query, key_inp, params, num_heads=num_heads)

    # fp32-operand path (tight tolerance).
    y = cross_attn_block_forward(query, key_inp, params, num_heads=num_heads,
                                 compute_dtype=jnp.float32, tm=256)
    y = jax.block_until_ready(y)
    assert y.shape == (B, N, dim)
    err = float(jnp.max(jnp.abs(y - y_ref)))
    assert jnp.allclose(y, y_ref, atol=1e-3, rtol=1e-3), f"fp32 mismatch, max err {err}"

    # bf16 MXU-operand path (f32 accumulation) — the recommended perf config.
    y_bf = cross_attn_block_forward(query, key_inp, params, num_heads=num_heads,
                                    compute_dtype=jnp.bfloat16, tm=256)
    y_bf = jax.block_until_ready(y_bf).astype(jnp.float32)
    err_bf = float(jnp.max(jnp.abs(y_bf - y_ref)))
    assert jnp.allclose(y_bf, y_ref, atol=5e-2, rtol=5e-2), f"bf16 mismatch, max err {err_bf}"

    print("KERNEL_OK")
</pallas_src>

<mosaic_0001>
module attributes {stable_mosaic.version = 11 : i64} {
  func.func @_cross_attn_kernel(%arg0: i32, %arg1: memref<1x8x32xf32, #tpu.memory_space<vmem>>, %arg2: memref<1x16x32xf32, #tpu.memory_space<vmem>>, %arg3: memref<1x32xf32, #tpu.memory_space<vmem>>, %arg4: memref<1x32xf32, #tpu.memory_space<vmem>>, %arg5: memref<1x32xf32, #tpu.memory_space<vmem>>, %arg6: memref<1x32xf32, #tpu.memory_space<vmem>>, %arg7: memref<32x32xf32, #tpu.memory_space<vmem>>, %arg8: memref<32x32xf32, #tpu.memory_space<vmem>>, %arg9: memref<32x32xf32, #tpu.memory_space<vmem>>, %arg10: memref<32x32xf32, #tpu.memory_space<vmem>>, %arg11: memref<1x32xf32, #tpu.memory_space<vmem>>, %arg12: memref<1x8x32xf32, #tpu.memory_space<vmem>>) attributes {dimension_semantics = [#tpu.dimension_semantics<parallel>], iteration_bounds = array<i64: 2>, scalar_prefetch = 0 : i64, scratch_operands = 0 : i64, tpu.core_type = #tpu.core_type<tc>, window_params = [{transform_indices = @transform_0, window_bounds = array<i64: 1, 8, 32>}, {transform_indices = @transform_1, window_bounds = array<i64: 1, 16, 32>}, {pipeline_mode = #tpu.pipeline_mode<synchronous>, transform_indices = @transform_2, window_bounds = array<i64: 1, 32>}, {pipeline_mode = #tpu.pipeline_mode<synchronous>, transform_indices = @transform_3, window_bounds = array<i64: 1, 32>}, {pipeline_mode = #tpu.pipeline_mode<synchronous>, transform_indices = @transform_4, window_bounds = array<i64: 1, 32>}, {pipeline_mode = #tpu.pipeline_mode<synchronous>, transform_indices = @transform_5, window_bounds = array<i64: 1, 32>}, {pipeline_mode = #tpu.pipeline_mode<synchronous>, transform_indices = @transform_6, window_bounds = array<i64: 32, 32>}, {pipeline_mode = #tpu.pipeline_mode<synchronous>, transform_indices = @transform_7, window_bounds = array<i64: 32, 32>}, {pipeline_mode = #tpu.pipeline_mode<synchronous>, transform_indices = @transform_8, window_bounds = array<i64: 32, 32>}, {pipeline_mode = #tpu.pipeline_mode<synchronous>, transform_indices = @transform_9, window_bounds = array<i64: 32, 32>}, {pipeline_mode = #tpu.pipeline_mode<synchronous>, transform_indices = @transform_10, window_bounds = array<i64: 1, 32>}, {transform_indices = @transform_11, window_bounds = array<i64: 1, 8, 32>}]} {
    %c0 = arith.constant 0 : index
    %c0_0 = arith.constant 0 : index
    %c0_1 = arith.constant 0 : index
    %0 = vector.load %arg1[%c0, %c0_0, %c0_1] : memref<1x8x32xf32, #tpu.memory_space<vmem>>, vector<1x8x32xf32>
    %1 = vector.shape_cast %0 : vector<1x8x32xf32> to vector<8x32xf32>
    %c0_2 = arith.constant 0 : index
    %c0_3 = arith.constant 0 : index
    %c0_4 = arith.constant 0 : index
    %2 = vector.load %arg2[%c0_2, %c0_3, %c0_4] : memref<1x16x32xf32, #tpu.memory_space<vmem>>, vector<1x16x32xf32>
    %3 = vector.shape_cast %2 : vector<1x16x32xf32> to vector<16x32xf32>
    %c0_5 = arith.constant 0 : index
    %c0_6 = arith.constant 0 : index
    %4 = vector.load %arg3[%c0_5, %c0_6] : memref<1x32xf32, #tpu.memory_space<vmem>>, vector<1x32xf32>
    %c0_7 = arith.constant 0 : index
    %c0_8 = arith.constant 0 : index
    %5 = vector.load %arg4[%c0_7, %c0_8] : memref<1x32xf32, #tpu.memory_space<vmem>>, vector<1x32xf32>
    %cst = arith.constant dense<0.000000e+00> : vector<8xf32>
    %6 = vector.multi_reduction <add>, %1, %cst [1] : vector<8x32xf32> to vector<8xf32>
    %7 = vector.shape_cast %6 : vector<8xf32> to vector<8x1xf32>
    %cst_9 = arith.constant 3.200000e+01 : f32
    %8 = vector.broadcast %cst_9 : f32 to vector<8x1xf32>
    %9 = arith.divf %7, %8 : vector<8x1xf32>
    %10 = vector.broadcast %9 : vector<8x1xf32> to vector<8x32xf32>
    %11 = arith.subf %1, %10 : vector<8x32xf32>
    %12 = arith.mulf %11, %11 : vector<8x32xf32>
    %cst_10 = arith.constant dense<0.000000e+00> : vector<8xf32>
    %13 = vector.multi_reduction <add>, %12, %cst_10 [1] : vector<8x32xf32> to vector<8xf32>
    %14 = vector.shape_cast %13 : vector<8xf32> to vector<8x1xf32>
    %cst_11 = arith.constant 3.200000e+01 : f32
    %15 = vector.broadcast %cst_11 : f32 to vector<8x1xf32>
    %16 = arith.divf %14, %15 : vector<8x1xf32>
    %cst_12 = arith.constant 9.99999974E-6 : f32
    %17 = vector.broadcast %cst_12 : f32 to vector<8x1xf32>
    %18 = arith.addf %16, %17 : vector<8x1xf32>
    %19 = math.rsqrt %18 : vector<8x1xf32>
    %20 = vector.broadcast %19 : vector<8x1xf32> to vector<8x32xf32>
    %21 = arith.mulf %11, %20 : vector<8x32xf32>
    %22 = vector.broadcast %4 : vector<1x32xf32> to vector<8x32xf32>
    %23 = arith.mulf %21, %22 : vector<8x32xf32>
    %24 = vector.broadcast %5 : vector<1x32xf32> to vector<8x32xf32>
    %25 = arith.addf %23, %24 : vector<8x32xf32>
    %c0_13 = arith.constant 0 : index
    %c0_14 = arith.constant 0 : index
    %26 = vector.load %arg5[%c0_13, %c0_14] : memref<1x32xf32, #tpu.memory_space<vmem>>, vector<1x32xf32>
    %c0_15 = arith.constant 0 : index
    %c0_16 = arith.constant 0 : index
    %27 = vector.load %arg6[%c0_15, %c0_16] : memref<1x32xf32, #tpu.memory_space<vmem>>, vector<1x32xf32>
    %cst_17 = arith.constant dense<0.000000e+00> : vector<16xf32>
    %28 = vector.multi_reduction <add>, %3, %cst_17 [1] : vector<16x32xf32> to vector<16xf32>
    %29 = vector.shape_cast %28 : vector<16xf32> to vector<16x1xf32>
    %cst_18 = arith.constant 3.200000e+01 : f32
    %30 = vector.broadcast %cst_18 : f32 to vector<16x1xf32>
    %31 = arith.divf %29, %30 : vector<16x1xf32>
    %32 = vector.broadcast %31 : vector<16x1xf32> to vector<16x32xf32>
    %33 = arith.subf %3, %32 : vector<16x32xf32>
    %34 = arith.mulf %33, %33 : vector<16x32xf32>
    %cst_19 = arith.constant dense<0.000000e+00> : vector<16xf32>
    %35 = vector.multi_reduction <add>, %34, %cst_19 [1] : vector<16x32xf32> to vector<16xf32>
    %36 = vector.shape_cast %35 : vector<16xf32> to vector<16x1xf32>
    %cst_20 = arith.constant 3.200000e+01 : f32
    %37 = vector.broadcast %cst_20 : f32 to vector<16x1xf32>
    %38 = arith.divf %36, %37 : vector<16x1xf32>
    %cst_21 = arith.constant 9.99999974E-6 : f32
    %39 = vector.broadcast %cst_21 : f32 to vector<16x1xf32>
    %40 = arith.addf %38, %39 : vector<16x1xf32>
    %41 = math.rsqrt %40 : vector<16x1xf32>
    %42 = vector.broadcast %41 : vector<16x1xf32> to vector<16x32xf32>
    %43 = arith.mulf %33, %42 : vector<16x32xf32>
    %44 = vector.broadcast %26 : vector<1x32xf32> to vector<16x32xf32>
    %45 = arith.mulf %43, %44 : vector<16x32xf32>
    %46 = vector.broadcast %27 : vector<1x32xf32> to vector<16x32xf32>
    %47 = arith.addf %45, %46 : vector<16x32xf32>
    %cst_22 = arith.constant 0.000000e+00 : f32
    %48 = vector.broadcast %cst_22 : f32 to vector<8x32xf32>
    %c0_23 = arith.constant 0 : index
    %c0_24 = arith.constant 0 : index
    %49 = vector.load %arg7[%c0_23, %c0_24] : memref<32x32xf32, #tpu.memory_space<vmem>>, vector<32x8xf32>
    %cst_25 = arith.constant dense<0.000000e+00> : vector<8x8xf32>
    %50 = tpu.matmul %25, %49, %cst_25 {dimension_numbers = #tpu.dot_dimension_numbers<[1], [0], [0], [1], [0, 0, 1, 1], [], []>} : vector<8x32xf32>, vector<32x8xf32>, vector<8x8xf32> -> vector<8x8xf32>
    %c0_26 = arith.constant 0 : index
    %c0_27 = arith.constant 0 : index
    %51 = vector.load %arg8[%c0_26, %c0_27] : memref<32x32xf32, #tpu.memory_space<vmem>>, vector<32x8xf32>
    %cst_28 = arith.constant dense<0.000000e+00> : vector<16x8xf32>
    %52 = tpu.matmul %47, %51, %cst_28 {dimension_numbers = #tpu.dot_dimension_numbers<[1], [0], [0], [1], [0, 0, 1, 1], [], []>} : vector<16x32xf32>, vector<32x8xf32>, vector<16x8xf32> -> vector<16x8xf32>
    %c0_29 = arith.constant 0 : index
    %c0_30 = arith.constant 0 : index
    %53 = vector.load %arg9[%c0_29, %c0_30] : memref<32x32xf32, #tpu.memory_space<vmem>>, vector<32x8xf32>
    %cst_31 = arith.constant dense<0.000000e+00> : vector<16x8xf32>
    %54 = tpu.matmul %47, %53, %cst_31 {dimension_numbers = #tpu.dot_dimension_numbers<[1], [0], [0], [1], [0, 0, 1, 1], [], []>} : vector<16x32xf32>, vector<32x8xf32>, vector<16x8xf32> -> vector<16x8xf32>
    %cst_32 = arith.constant dense<0.000000e+00> : vector<8x16xf32>
    %55 = tpu.matmul %50, %52, %cst_32 {dimension_numbers = #tpu.dot_dimension_numbers<[1], [1], [0], [0], [0, 0, 1, 0], [], []>} : vector<8x8xf32>, vector<16x8xf32>, vector<8x16xf32> -> vector<8x16xf32>
    %cst_33 = arith.constant 0.353553385 : f32
    %56 = vector.broadcast %cst_33 : f32 to vector<8x16xf32>
    %57 = arith.mulf %55, %56 : vector<8x16xf32>
    %cst_34 = arith.constant dense<0xFF800000> : vector<8xf32>
    %58 = vector.multi_reduction <maximumf>, %57, %cst_34 [1] : vector<8x16xf32> to vector<8xf32>
    %59 = vector.shape_cast %58 : vector<8xf32> to vector<8x1xf32>
    %60 = vector.broadcast %59 : vector<8x1xf32> to vector<8x16xf32>
    %61 = arith.subf %57, %60 : vector<8x16xf32>
    %62 = math.exp %61 : vector<8x16xf32>
    %cst_35 = arith.constant dense<0.000000e+00> : vector<8xf32>
    %63 = vector.multi_reduction <add>, %62, %cst_35 [1] : vector<8x16xf32> to vector<8xf32>
    %64 = vector.shape_cast %63 : vector<8xf32> to vector<8x1xf32>
    %65 = vector.broadcast %64 : vector<8x1xf32> to vector<8x16xf32>
    %66 = arith.divf %62, %65 : vector<8x16xf32>
    %cst_36 = arith.constant dense<0.000000e+00> : vector<8x8xf32>
    %67 = tpu.matmul %66, %54, %cst_36 {dimension_numbers = #tpu.dot_dimension_numbers<[1], [0], [0], [1], [0, 0, 1, 1], [], []>} : vector<8x16xf32>, vector<16x8xf32>, vector<8x8xf32> -> vector<8x8xf32>
    %c0_37 = arith.constant 0 : index
    %c0_38 = arith.constant 0 : index
    %68 = vector.load %arg10[%c0_37, %c0_38] : memref<32x32xf32, #tpu.memory_space<vmem>>, vector<8x32xf32>
    %cst_39 = arith.constant dense<0.000000e+00> : vector<8x32xf32>
    %69 = tpu.matmul %67, %68, %cst_39 {dimension_numbers = #tpu.dot_dimension_numbers<[1], [0], [0], [1], [0, 0, 1, 1], [], []>} : vector<8x8xf32>, vector<8x32xf32>, vector<8x32xf32> -> vector<8x32xf32>
    %70 = arith.addf %48, %69 : vector<8x32xf32>
    %c0_40 = arith.constant 0 : index
    %c8 = arith.constant 8 : index
    %71 = vector.load %arg7[%c0_40, %c8] : memref<32x32xf32, #tpu.memory_space<vmem>>, vector<32x8xf32>
    %cst_41 = arith.constant dense<0.000000e+00> : vector<8x8xf32>
    %72 = tpu.matmul %25, %71, %cst_41 {dimension_numbers = #tpu.dot_dimension_numbers<[1], [0], [0], [1], [0, 0, 1, 1], [], []>} : vector<8x32xf32>, vector<32x8xf32>, vector<8x8xf32> -> vector<8x8xf32>
    %c0_42 = arith.constant 0 : index
    %c8_43 = arith.constant 8 : index
    %73 = vector.load %arg8[%c0_42, %c8_43] : memref<32x32xf32, #tpu.memory_space<vmem>>, vector<32x8xf32>
    %cst_44 = arith.constant dense<0.000000e+00> : vector<16x8xf32>
    %74 = tpu.matmul %47, %73, %cst_44 {dimension_numbers = #tpu.dot_dimension_numbers<[1], [0], [0], [1], [0, 0, 1, 1], [], []>} : vector<16x32xf32>, vector<32x8xf32>, vector<16x8xf32> -> vector<16x8xf32>
    %c0_45 = arith.constant 0 : index
    %c8_46 = arith.constant 8 : index
    %75 = vector.load %arg9[%c0_45, %c8_46] : memref<32x32xf32, #tpu.memory_space<vmem>>, vector<32x8xf32>
    %cst_47 = arith.constant dense<0.000000e+00> : vector<16x8xf32>
    %76 = tpu.matmul %47, %75, %cst_47 {dimension_numbers = #tpu.dot_dimension_numbers<[1], [0], [0], [1], [0, 0, 1, 1], [], []>} : vector<16x32xf32>, vector<32x8xf32>, vector<16x8xf32> -> vector<16x8xf32>
    %cst_48 = arith.constant dense<0.000000e+00> : vector<8x16xf32>
    %77 = tpu.matmul %72, %74, %cst_48 {dimension_numbers = #tpu.dot_dimension_numbers<[1], [1], [0], [0], [0, 0, 1, 0], [], []>} : vector<8x8xf32>, vector<16x8xf32>, vector<8x16xf32> -> vector<8x16xf32>
    %cst_49 = arith.constant 0.353553385 : f32
    %78 = vector.broadcast %cst_49 : f32 to vector<8x16xf32>
    %79 = arith.mulf %77, %78 : vector<8x16xf32>
    %cst_50 = arith.constant dense<0xFF800000> : vector<8xf32>
    %80 = vector.multi_reduction <maximumf>, %79, %cst_50 [1] : vector<8x16xf32> to vector<8xf32>
    %81 = vector.shape_cast %80 : vector<8xf32> to vector<8x1xf32>
    %82 = vector.broadcast %81 : vector<8x1xf32> to vector<8x16xf32>
    %83 = arith.subf %79, %82 : vector<8x16xf32>
    %84 = math.exp %83 : vector<8x16xf32>
    %cst_51 = arith.constant dense<0.000000e+00> : vector<8xf32>
    %85 = vector.multi_reduction <add>, %84, %cst_51 [1] : vector<8x16xf32> to vector<8xf32>
    %86 = vector.shape_cast %85 : vector<8xf32> to vector<8x1xf32>
    %87 = vector.broadcast %86 : vector<8x1xf32> to vector<8x16xf32>
    %88 = arith.divf %84, %87 : vector<8x16xf32>
    %cst_52 = arith.constant dense<0.000000e+00> : vector<8x8xf32>
    %89 = tpu.matmul %88, %76, %cst_52 {dimension_numbers = #tpu.dot_dimension_numbers<[1], [0], [0], [1], [0, 0, 1, 1], [], []>} : vector<8x16xf32>, vector<16x8xf32>, vector<8x8xf32> -> vector<8x8xf32>
    %c8_53 = arith.constant 8 : index
    %c0_54 = arith.constant 0 : index
    %90 = vector.load %arg10[%c8_53, %c0_54] : memref<32x32xf32, #tpu.memory_space<vmem>>, vector<8x32xf32>
    %cst_55 = arith.constant dense<0.000000e+00> : vector<8x32xf32>
    %91 = tpu.matmul %89, %90, %cst_55 {dimension_numbers = #tpu.dot_dimension_numbers<[1], [0], [0], [1], [0, 0, 1, 1], [], []>} : vector<8x8xf32>, vector<8x32xf32>, vector<8x32xf32> -> vector<8x32xf32>
    %92 = arith.addf %70, %91 : vector<8x32xf32>
    %c0_56 = arith.constant 0 : index
    %c16 = arith.constant 16 : index
    %93 = vector.load %arg7[%c0_56, %c16] : memref<32x32xf32, #tpu.memory_space<vmem>>, vector<32x8xf32>
    %cst_57 = arith.constant dense<0.000000e+00> : vector<8x8xf32>
    %94 = tpu.matmul %25, %93, %cst_57 {dimension_numbers = #tpu.dot_dimension_numbers<[1], [0], [0], [1], [0, 0, 1, 1], [], []>} : vector<8x32xf32>, vector<32x8xf32>, vector<8x8xf32> -> vector<8x8xf32>
    %c0_58 = arith.constant 0 : index
    %c16_59 = arith.constant 16 : index
    %95 = vector.load %arg8[%c0_58, %c16_59] : memref<32x32xf32, #tpu.memory_space<vmem>>, vector<32x8xf32>
    %cst_60 = arith.constant dense<0.000000e+00> : vector<16x8xf32>
    %96 = tpu.matmul %47, %95, %cst_60 {dimension_numbers = #tpu.dot_dimension_numbers<[1], [0], [0], [1], [0, 0, 1, 1], [], []>} : vector<16x32xf32>, vector<32x8xf32>, vector<16x8xf32> -> vector<16x8xf32>
    %c0_61 = arith.constant 0 : index
    %c16_62 = arith.constant 16 : index
    %97 = vector.load %arg9[%c0_61, %c16_62] : memref<32x32xf32, #tpu.memory_space<vmem>>, vector<32x8xf32>
    %cst_63 = arith.constant dense<0.000000e+00> : vector<16x8xf32>
    %98 = tpu.matmul %47, %97, %cst_63 {dimension_numbers = #tpu.dot_dimension_numbers<[1], [0], [0], [1], [0, 0, 1, 1], [], []>} : vector<16x32xf32>, vector<32x8xf32>, vector<16x8xf32> -> vector<16x8xf32>
    %cst_64 = arith.constant dense<0.000000e+00> : vector<8x16xf32>
    %99 = tpu.matmul %94, %96, %cst_64 {dimension_numbers = #tpu.dot_dimension_numbers<[1], [1], [0], [0], [0, 0, 1, 0], [], []>} : vector<8x8xf32>, vector<16x8xf32>, vector<8x16xf32> -> vector<8x16xf32>
    %cst_65 = arith.constant 0.353553385 : f32
    %100 = vector.broadcast %cst_65 : f32 to vector<8x16xf32>
    %101 = arith.mulf %99, %100 : vector<8x16xf32>
    %cst_66 = arith.constant dense<0xFF800000> : vector<8xf32>
    %102 = vector.multi_reduction <maximumf>, %101, %cst_66 [1] : vector<8x16xf32> to vector<8xf32>
    %103 = vector.shape_cast %102 : vector<8xf32> to vector<8x1xf32>
    %104 = vector.broadcast %103 : vector<8x1xf32> to vector<8x16xf32>
    %105 = arith.subf %101, %104 : vector<8x16xf32>
    %106 = math.exp %105 : vector<8x16xf32>
    %cst_67 = arith.constant dense<0.000000e+00> : vector<8xf32>
    %107 = vector.multi_reduction <add>, %106, %cst_67 [1] : vector<8x16xf32> to vector<8xf32>
    %108 = vector.shape_cast %107 : vector<8xf32> to vector<8x1xf32>
    %109 = vector.broadcast %108 : vector<8x1xf32> to vector<8x16xf32>
    %110 = arith.divf %106, %109 : vector<8x16xf32>
    %cst_68 = arith.constant dense<0.000000e+00> : vector<8x8xf32>
    %111 = tpu.matmul %110, %98, %cst_68 {dimension_numbers = #tpu.dot_dimension_numbers<[1], [0], [0], [1], [0, 0, 1, 1], [], []>} : vector<8x16xf32>, vector<16x8xf32>, vector<8x8xf32> -> vector<8x8xf32>
    %c16_69 = arith.constant 16 : index
    %c0_70 = arith.constant 0 : index
    %112 = vector.load %arg10[%c16_69, %c0_70] : memref<32x32xf32, #tpu.memory_space<vmem>>, vector<8x32xf32>
    %cst_71 = arith.constant dense<0.000000e+00> : vector<8x32xf32>
    %113 = tpu.matmul %111, %112, %cst_71 {dimension_numbers = #tpu.dot_dimension_numbers<[1], [0], [0], [1], [0, 0, 1, 1], [], []>} : vector<8x8xf32>, vector<8x32xf32>, vector<8x32xf32> -> vector<8x32xf32>
    %114 = arith.addf %92, %113 : vector<8x32xf32>
    %c0_72 = arith.constant 0 : index
    %c24 = arith.constant 24 : index
    %115 = vector.load %arg7[%c0_72, %c24] : memref<32x32xf32, #tpu.memory_space<vmem>>, vector<32x8xf32>
    %cst_73 = arith.constant dense<0.000000e+00> : vector<8x8xf32>
    %116 = tpu.matmul %25, %115, %cst_73 {dimension_numbers = #tpu.dot_dimension_numbers<[1], [0], [0], [1], [0, 0, 1, 1], [], []>} : vector<8x32xf32>, vector<32x8xf32>, vector<8x8xf32> -> vector<8x8xf32>
    %c0_74 = arith.constant 0 : index
    %c24_75 = arith.constant 24 : index
    %117 = vector.load %arg8[%c0_74, %c24_75] : memref<32x32xf32, #tpu.memory_space<vmem>>, vector<32x8xf32>
    %cst_76 = arith.constant dense<0.000000e+00> : vector<16x8xf32>
    %118 = tpu.matmul %47, %117, %cst_76 {dimension_numbers = #tpu.dot_dimension_numbers<[1], [0], [0], [1], [0, 0, 1, 1], [], []>} : vector<16x32xf32>, vector<32x8xf32>, vector<16x8xf32> -> vector<16x8xf32>
    %c0_77 = arith.constant 0 : index
    %c24_78 = arith.constant 24 : index
    %119 = vector.load %arg9[%c0_77, %c24_78] : memref<32x32xf32, #tpu.memory_space<vmem>>, vector<32x8xf32>
    %cst_79 = arith.constant dense<0.000000e+00> : vector<16x8xf32>
    %120 = tpu.matmul %47, %119, %cst_79 {dimension_numbers = #tpu.dot_dimension_numbers<[1], [0], [0], [1], [0, 0, 1, 1], [], []>} : vector<16x32xf32>, vector<32x8xf32>, vector<16x8xf32> -> vector<16x8xf32>
    %cst_80 = arith.constant dense<0.000000e+00> : vector<8x16xf32>
    %121 = tpu.matmul %116, %118, %cst_80 {dimension_numbers = #tpu.dot_dimension_numbers<[1], [1], [0], [0], [0, 0, 1, 0], [], []>} : vector<8x8xf32>, vector<16x8xf32>, vector<8x16xf32> -> vector<8x16xf32>
    %cst_81 = arith.constant 0.353553385 : f32
    %122 = vector.broadcast %cst_81 : f32 to vector<8x16xf32>
    %123 = arith.mulf %121, %122 : vector<8x16xf32>
    %cst_82 = arith.constant dense<0xFF800000> : vector<8xf32>
    %124 = vector.multi_reduction <maximumf>, %123, %cst_82 [1] : vector<8x16xf32> to vector<8xf32>
    %125 = vector.shape_cast %124 : vector<8xf32> to vector<8x1xf32>
    %126 = vector.broadcast %125 : vector<8x1xf32> to vector<8x16xf32>
    %127 = arith.subf %123, %126 : vector<8x16xf32>
    %128 = math.exp %127 : vector<8x16xf32>
    %cst_83 = arith.constant dense<0.000000e+00> : vector<8xf32>
    %129 = vector.multi_reduction <add>, %128, %cst_83 [1] : vector<8x16xf32> to vector<8xf32>
    %130 = vector.shape_cast %129 : vector<8xf32> to vector<8x1xf32>
    %131 = vector.broadcast %130 : vector<8x1xf32> to vector<8x16xf32>
    %132 = arith.divf %128, %131 : vector<8x16xf32>
    %cst_84 = arith.constant dense<0.000000e+00> : vector<8x8xf32>
    %133 = tpu.matmul %132, %120, %cst_84 {dimension_numbers = #tpu.dot_dimension_numbers<[1], [0], [0], [1], [0, 0, 1, 1], [], []>} : vector<8x16xf32>, vector<16x8xf32>, vector<8x8xf32> -> vector<8x8xf32>
    %c24_85 = arith.constant 24 : index
    %c0_86 = arith.constant 0 : index
    %134 = vector.load %arg10[%c24_85, %c0_86] : memref<32x32xf32, #tpu.memory_space<vmem>>, vector<8x32xf32>
    %cst_87 = arith.constant dense<0.000000e+00> : vector<8x32xf32>
    %135 = tpu.matmul %133, %134, %cst_87 {dimension_numbers = #tpu.dot_dimension_numbers<[1], [0], [0], [1], [0, 0, 1, 1], [], []>} : vector<8x8xf32>, vector<8x32xf32>, vector<8x32xf32> -> vector<8x32xf32>
    %136 = arith.addf %114, %135 : vector<8x32xf32>
    %137 = arith.addf %1, %136 : vector<8x32xf32>
    %c0_88 = arith.constant 0 : index
    %c0_89 = arith.constant 0 : index
    %138 = vector.load %arg11[%c0_88, %c0_89] : memref<1x32xf32, #tpu.memory_space<vmem>>, vector<1x32xf32>
    %139 = vector.broadcast %138 : vector<1x32xf32> to vector<8x32xf32>
    %140 = arith.addf %137, %139 : vector<8x32xf32>
    %c0_90 = arith.constant 0 : index
    %c0_91 = arith.constant 0 : index
    %c0_92 = arith.constant 0 : index
    %141 = vector.load %arg12[%c0_90, %c0_91, %c0_92] : memref<1x8x32xf32, #tpu.memory_space<vmem>>, vector<1x8x32xf32>
    %142 = vector.shape_cast %141 : vector<1x8x32xf32> to vector<8x32xf32>
    %143 = vector.shape_cast %140 : vector<8x32xf32> to vector<1x8x32xf32>
    tpu.vector_store %arg12[%c0_90, %c0_91, %c0_92], %143 {strides = array<i32>} : memref<1x8x32xf32, #tpu.memory_space<vmem>>, vector<1x8x32xf32>,
    return
  }
  func.func @transform_0(%arg0: i32) -> (i32, i32, i32) {
    %c0_i32 = arith.constant 0 : i32
    %c0_i32_0 = arith.constant 0 : i32
    %c0_i32_1 = arith.constant 0 : i32
    return %arg0, %c0_i32, %c0_i32_0 : i32, i32, i32
  }
  func.func @transform_1(%arg0: i32) -> (i32, i32, i32) {
    %c0_i32 = arith.constant 0 : i32
    %c0_i32_0 = arith.constant 0 : i32
    %c0_i32_1 = arith.constant 0 : i32
    return %arg0, %c0_i32, %c0_i32_0 : i32, i32, i32
  }
  func.func @transform_2(%arg0: i32) -> (i32, i32) {
    %c0_i32 = arith.constant 0 : i32
    %c0_i32_0 = arith.constant 0 : i32
    %c0_i32_1 = arith.constant 0 : i32
    return %c0_i32, %c0_i32_0 : i32, i32
  }
  func.func @transform_3(%arg0: i32) -> (i32, i32) {
    %c0_i32 = arith.constant 0 : i32
    %c0_i32_0 = arith.constant 0 : i32
    %c0_i32_1 = arith.constant 0 : i32
    return %c0_i32, %c0_i32_0 : i32, i32
  }
  func.func @transform_4(%arg0: i32) -> (i32, i32) {
    %c0_i32 = arith.constant 0 : i32
    %c0_i32_0 = arith.constant 0 : i32
    %c0_i32_1 = arith.constant 0 : i32
    return %c0_i32, %c0_i32_0 : i32, i32
  }
  func.func @transform_5(%arg0: i32) -> (i32, i32) {
    %c0_i32 = arith.constant 0 : i32
    %c0_i32_0 = arith.constant 0 : i32
    %c0_i32_1 = arith.constant 0 : i32
    return %c0_i32, %c0_i32_0 : i32, i32
  }
  func.func @transform_6(%arg0: i32) -> (i32, i32) {
    %c0_i32 = arith.constant 0 : i32
    %c0_i32_0 = arith.constant 0 : i32
    %c0_i32_1 = arith.constant 0 : i32
    return %c0_i32, %c0_i32_0 : i32, i32
  }
  func.func @transform_7(%arg0: i32) -> (i32, i32) {
    %c0_i32 = arith.constant 0 : i32
    %c0_i32_0 = arith.constant 0 : i32
    %c0_i32_1 = arith.constant 0 : i32
    return %c0_i32, %c0_i32_0 : i32, i32
  }
  func.func @transform_8(%arg0: i32) -> (i32, i32) {
    %c0_i32 = arith.constant 0 : i32
    %c0_i32_0 = arith.constant 0 : i32
    %c0_i32_1 = arith.constant 0 : i32
    return %c0_i32, %c0_i32_0 : i32, i32
  }
  func.func @transform_9(%arg0: i32) -> (i32, i32) {
    %c0_i32 = arith.constant 0 : i32
    %c0_i32_0 = arith.constant 0 : i32
    %c0_i32_1 = arith.constant 0 : i32
    return %c0_i32, %c0_i32_0 : i32, i32
  }
  func.func @transform_10(%arg0: i32) -> (i32, i32) {
    %c0_i32 = arith.constant 0 : i32
    %c0_i32_0 = arith.constant 0 : i32
    %c0_i32_1 = arith.constant 0 : i32
    return %c0_i32, %c0_i32_0 : i32, i32
  }
  func.func @transform_11(%arg0: i32) -> (i32, i32, i32) {
    %c0_i32 = arith.constant 0 : i32
    %c0_i32_0 = arith.constant 0 : i32
    %c0_i32_1 = arith.constant 0 : i32
    return %arg0, %c0_i32, %c0_i32_0 : i32, i32, i32
  }
}

</mosaic_0001>

<bundles_post_ra>
// kernel: tpu_custom_call.1
= control target key start
LH: loop header
LB: loop body
LE: loop exit
PB: predicated region body
PF: predicated region fallthrough
CT: control target
= control target key end

     0   :  { %s2626_s0 = inlined_call_operand.hbm [shape: f32[2,8,32], index: 0, kind: input, shape index: {}]   ;;  %s2627_s1 = inlined_call_operand.hbm [shape: f32[2,16,32], index: 1, kind: input, shape index: {}]   ;;  %s2628_s2 = inlined_call_operand.vmem [shape: f32[1,32], index: 2, kind: input, shape index: {}]   ;;  %s2629_s3 = inlined_call_operand.vmem [shape: f32[1,32], index: 3, kind: input, shape index: {}]   ;;  %s2630_s4 = inlined_call_operand.vmem [shape: f32[1,32], index: 4, kind: input, shape index: {}]   ;;  %s2631_s5 = inlined_call_operand.vmem [shape: f32[1,32], index: 5, kind: input, shape index: {}]   ;;  %s2632_s6 = inlined_call_operand.hbm [shape: f32[32,32], index: 6, kind: input, shape index: {}]   ;;  %s2633_s7 = inlined_call_operand.hbm [shape: f32[32,32], index: 7, kind: input, shape index: {}]   ;;  %s2634_s8 = inlined_call_operand.hbm [shape: f32[32,32], index: 8, kind: input, shape index: {}]   ;;  %s2635_s9 = inlined_call_operand.hbm [shape: f32[32,32], index: 9, kind: input, shape index: {}]   ;;  %s2636_s10 = inlined_call_operand.vmem [shape: f32[1,32], index: 10, kind: input, shape index: {}]   ;;  %s2637_s11 = inlined_call_operand.hbm [shape: f32[2,8,32], index: 11, kind: output, shape index: {}]  }
   0x1   :  { %2645 = sst [smem:[#allocation25_spill]] %s2632_s6 }
   0x2   :  { %2646 = sst [smem:[#allocation26_spill]] %s2633_s7 }
   0x3   :  { %2647 = sst [smem:[#allocation27_spill]] %s2634_s8 }
   0x4   :  { %2648 = sst [smem:[#allocation28_spill]] %s2635_s9 }
   0x5   :  { %2649 = sst [smem:[#allocation29_spill]] %s2636_s10 }
   0x6   :  { %16 = vsyncpa [#allocation3], 0 }
   0x7   :  { %18 = vsyncpa [#allocation3 + $0x1], 0 }
   0x8   :  { %19 = vsyncpa [#allocation6], 0 }
   0x9   :  { %21 = vsyncpa [#allocation6 + $0x1], 0 }
   0xa   :  { %22 = vsyncpa [#allocation9], 0 }
   0xb   :  { %23 = vsyncpa [#allocation12], 0 }
   0xc   :  { %24 = vsyncpa [#allocation4], 0 }
   0xd   :  { %26 = vsyncpa [#allocation4 + $0x1], 0  ;;  %s2194_s17 = smov 0   ;;  %s2196_s18 = smov 0  }
   0xe   :  { %s2198_s19 = smov 0   ;;  %s2200_s20 = smov 0  }
   0xf LB: > { %2650 = sst [smem:[#allocation20_spill]] %s2110_s17  ;;  %s2218_s24 = sadd.s32 4294967295, %s2122_s20   ;;  %s2122_s20 = sphi %s2200_s20, %s2672_s20   ;;  %s2118_s19 = sphi %s2198_s19, %s2674_s19   ;;  %s2114_s18 = sphi %s2196_s18, %s2676_s18   ;;  %s2110_s17 = sphi %s2194_s17, %s2675_s17  }
  0x10   : > { %2651 = sst [smem:[#allocation21_spill]] %s2118_s19  ;;  %p1579_p0 = scmp.ge.s32.totalorder %s2122_s20, 1 }
  0x11   : > { %s2652_s6 = sld [smem:[#allocation25_spill]]  ;;  %p53_p1 = scmp.eq.s32.totalorder %s2218_s24, 0 }
  0x12   : > { %p304_p2 = scmp.lt.s32.totalorder %s2122_s20, 3  ;;  %s2124_s26 = smov [#allocation7]  }
  0x13   : > { %s329_s27 = sshll.u32 %s2124_s26, 4  ;;  %s2654_s7 = sld [smem:[#allocation26_spill]]  ;;  %s330_s27 = int_to_ptr.vmem [resolvable:$true] %s329_s27 }
  0x14   : > { %p2223_p3 = pnand %p1579_p0, %p304_p2  ;;  %s2656_s8 = sld [smem:[#allocation27_spill]] }
  0x15   : > { %s2125_s16 = smov [#allocation8]   ;;  %s2638_s22 = smov 128  }
  0x16   : > { %p1665_p4 = pneg %p2223_p3  ;;  %s343_s21 = sshll.u32 %s2125_s16, 4  ;;  %s344_s21 = int_to_ptr.vmem [resolvable:$true] %s343_s21 }
  0x17   : > { %s327_s23 = sshll.u32 %s2652_s6, 4  ;;  %s2639_s26 = smov 8   ;;  %s328_s23 = int_to_ptr.hbm [resolvable:$true] %s327_s23 }
  0x18   : > { %p2235_p6 = pnand %p1665_p4, %p53_p1  ;;  %s2657_s9 = sld [smem:[#allocation28_spill]] }
  0x19   : > { %s341_s30 = sshll.u32 %s2654_s7, 4  ;;  %s2128_s14 = smov [#allocation10]   ;;  %s342_s30 = int_to_ptr.hbm [resolvable:$true] %s341_s30 }
  0x1a   : > { %s355_s15 = sshll.u32 %s2656_s8, 4  ;;  %s1578_s16 = sadd.s32 4294967294, %s2122_s20   ;;  %s356_s15 = int_to_ptr.hbm [resolvable:$true] %s355_s15 }
  0x1b   : > { %1668 = dma.hbm_to_vmem [thread:$0]  (!%p2235_p6), %s328_s23, 512, %s330_s27, [#allocation6], %s2638_s22, %s2638_s22, %s2639_s26  }
  0x1c   : > { %1671 = dma.hbm_to_vmem [thread:$0]  (!%p2235_p6), %s342_s30, 512, %s344_s21, [#allocation9], %s2638_s22, %s2638_s22, %s2639_s26  }
  0x1d   : > { %s357_s23 = sshll.u32 %s2128_s14, 4  ;;  %s2129_s27 = smov [#allocation11]   ;;  %s358_s23 = int_to_ptr.vmem [resolvable:$true] %s357_s23 }
  0x1e   : > { %s369_s13 = sshll.u32 %s2657_s9, 4  ;;  %s371_s30 = sshll.u32 %s2129_s27, 4  ;;  %s370_s13 = int_to_ptr.hbm [resolvable:$true] %s369_s13  ;;  %s372_s30 = int_to_ptr.vmem [resolvable:$true] %s371_s30 }
  0x1f   : > { %1674 = dma.hbm_to_vmem [thread:$0]  (!%p2235_p6), %s356_s15, 512, %s358_s23, [#allocation9], %s2638_s22, %s2638_s22, %s2639_s26  }
  0x20   : > { %1677 = dma.hbm_to_vmem [thread:$0]  (!%p2235_p6), %s370_s13, 512, %s372_s30, [#allocation12], %s2638_s22, %s2638_s22, %s2639_s26  }
  0x21   : > { %s2267_s21 = sadd.s32 1, %s2122_s20   ;;  %s39_s29 = sadd.s32 1, %s2118_s19 }
  0x22   : > { %2658 = sst [smem:[#allocation22_spill]] %s2267_s21  ;;  %s36_s28 = ssub.s32 %s2122_s20, %s2267_s21 }
  0x23   : > { %p37_p7 = scmp.eq.s32.totalorder %s36_s28, 0  ;;  %p46_p8 = scmp.ne.s32.totalorder %s2118_s19, %s2114_s18 }
  0x24   : > { %p47_p9 = scmp.eq.s32.totalorder %s2122_s20, 0  ;;  %p52_p10 = scmp.ne.s32.totalorder %s2114_s18, %s2110_s17 }
  0x25   : > { %s2278_s15 = scalar_select %p37_p7, %s2118_s19, %s39_s29  }
  0x26   : > { %p2280_p11 = por %p47_p9, %p46_p8  ;;  %p2286_p12 = por %p53_p1, %p52_p10 }
  0x27   : > { %2659 = sst [smem:[#allocation23_spill]] %s2278_s15  ;;  %p291_p13 = scmp.eq.s32.totalorder %s2218_s24, 1 }
  0x28   : > { %p297_p0 = scmp.eq.s32.totalorder %s1578_s16, 1  ;;  %p1693_p2 = scmp.lt.s32.totalorder %s2122_s20, 2 }
  0x29   : > { %s2293_s14 = sand.u32 1, %s2118_s19   ;;  %p2295_p4 = por %p291_p13, %p46_p8 }
  0x2a   : > { %p2299_p6 = por %p297_p0, %p52_p10  ;;  %s1585_s30 = sshll.u32 %s2293_s14, 3 }
  0x2b   : > { %s1586_s28 = sshll.u32 %s2122_s20, 3  ;;  %s392_s26 = scalar_lea.vmem [#allocation2], %s1585_s30 }
  0x2c   : > { %s2663_s27 = scalar_select %p2299_p6, 1, 0 }
  0x2d   : > { %s396_s16 = scalar_lea.hbm %s2626_s0, %s1586_s28  ;;  %s400_s6 = sshll.u32 %s392_s26, 4  ;;  %s401_s6 = int_to_ptr.vmem [resolvable:$true] %s400_s6 }
  0x2e   : > { %2664 = sst [smem:[#allocation24_spill]] %s2663_s27  ;;  %s398_s7 = sshll.u32 %s396_s16, 4  ;;  %s399_s7 = int_to_ptr.hbm [resolvable:$true] %s398_s7 }
  0x2f   : > { %p2310_p7 = pnand %p1693_p2, %p2280_p11  ;;  %s1587_s9 = sshll.u32 %s2293_s14, 4 }
  0x30   : > { %s407_s15 = sand.u32 1, %s2122_s20   ;;  %s389_s19 = scalar_lea.sflag [#allocation3], %s2293_s14 }
  0x31   : > { %s1980_s21 = sshra.s32 %s399_s7, 4  ;;  %p1984_p9 = pneg %p2310_p7  ;;  %s1981_s21 = int_to_ptr.hbm [resolvable:$true] %s1980_s21 }
  0x32   : > { %s1982_s27 = scalar_lea.hbm %s1981_s21, 8  ;;  %s1987_s12 = scalar_lea.hbm %s2626_s0, 16 }
  0x33   : > { %p1983_p8 = scmp.ne.s32.totalorder %s1981_s21, %s1982_s27  ;;  %p1988_p11 = scmp.lt.s32.totalorder %s1981_s21, %s2626_s0 }
  0x34   : > { %p1989_p0 = scmp.lt.s32.totalorder %s1987_s12, %s1982_s27 }
  0x35   : > { %p1985_p10 = pnand %p1984_p9, %p1983_p8 }
  0x36   : > { %p1990_p2 = por %p1989_p0, %p1988_p11 }
  0x37   : > { %p1986_p13 = pneg %p1985_p10 }
  0x39   : > { %p1991_p5 = pnand %p1990_p2, %p1986_p13 }
  0x3b   : > { %1994 = shalt.err (!%p1991_p5)
}
  0x3c   : > { %1681 = dma.hbm_to_vmem [thread:$0]  (!%p2310_p7), %s399_s7, 128, %s401_s6, %s389_s19  }
  0x3d   : > { %s411_s14 = scalar_lea.vmem [#allocation5], %s1587_s9  ;;  %s1642_s16 = sshll.u32 %s2122_s20, 4 }
  0x3e   : > { %s419_s29 = sshll.u32 %s411_s14, 4  ;;  %s416_s26 = scalar_lea.hbm %s2627_s1, %s1642_s16  ;;  %s420_s29 = int_to_ptr.vmem [resolvable:$true] %s419_s29 }
  0x3f   : > { %s417_s10 = sshll.u32 %s416_s26, 4  ;;  %s408_s21 = scalar_lea.sflag [#allocation6], %s407_s15  ;;  %s418_s10 = int_to_ptr.hbm [resolvable:$true] %s417_s10 }
  0x40   : > { %s2010_s27 = sshra.s32 %s418_s10, 4  ;;  %s2017_s9 = scalar_lea.hbm %s2627_s1, 32  ;;  %s2011_s27 = int_to_ptr.hbm [resolvable:$true] %s2010_s27 }
  0x41   : > { %s2012_s12 = scalar_lea.hbm %s2011_s27, 16  ;;  %p2018_p13 = scmp.lt.s32.totalorder %s2011_s27, %s2627_s1 }
  0x42   : > { %p2013_p5 = scmp.ne.s32.totalorder %s2011_s27, %s2012_s12  ;;  %p2019_p11 = scmp.lt.s32.totalorder %s2017_s9, %s2012_s12 }
  0x44   : > { %p2015_p8 = pnand %p2013_p5, %p1984_p9  ;;  %p2020_p0 = por %p2019_p11, %p2018_p13 }
  0x46   : > { %p2016_p10 = pneg %p2015_p8 }
  0x48   : > { %p2021_p2 = pnand %p2020_p0, %p2016_p10 }
  0x4a   : > { %2024 = shalt.err (!%p2021_p2)
}
  0x4b   : > { %s2666_s17 = smov 8   ;;  %s2667_s15 = smov 128  }
  0x4c   : > { %1684 = dma.hbm_to_vmem [thread:$0]  (!%p2310_p7), %s418_s10, 256, %s420_s29, %s408_s21, %s2667_s15, %s2667_s15, %s2666_s17  }
  0x4d   : > { %431 = sbr.rel (%p2223_p3) target bundleno = 2673 (0xa71), region = 64  ;;  %s2351_s28 = sand.u32 (!%p2223_p3), 1, %s2114_s18  }
  0x4e   : > { %s1591_s14 = sshll.u32 (!%p2223_p3), %s2351_s28, 3  ;;  %s434_s16 = scalar_lea.sflag (!%p2223_p3), [#allocation3], %s2351_s28 }
  0x4f   : > { %s437_s22 = scalar_lea.vmem (!%p2223_p3), [#allocation2], %s1591_s14 }
  0x52   : > { %2085 = dma.done.wait (%p2286_p12), %s434_s16, 128  }
  0x53   : > { %2087 = vsyncadd (%p2286_p12), %s434_s16, 4294967168  ;;  %s443_s8 = sand.u32 1, %s2218_s24   ;;  %s1592_s10 = sshll.u32 %s2351_s28, 4 }
  0x54   : > { %s444_s25 = scalar_lea.sflag [#allocation6], %s443_s8  ;;  %s447_s29 = scalar_lea.vmem [#allocation5], %s1592_s10 }
  0x55   : > { %2089 = dma.done.wait (%p2286_p12), %s444_s25, 256  }
  0x56   : > { %2091 = vsyncadd (%p2286_p12), %s444_s25, 4294967040 }
  0x57   : > { %2093 = dma.done.wait (%p53_p1), [#allocation6], 512  }
  0x58   : > { %2095 = vsyncadd (%p53_p1), [#allocation6], 4294966784 }
  0x59   : > { %2097 = dma.done.wait (%p53_p1), [#allocation9], 1024  }
  0x5a   : > { %2099 = vsyncadd (%p53_p1), [#allocation9], 4294966272 }
  0x5b   : > { %2101 = dma.done.wait (%p53_p1), [#allocation12], 512  }
  0x5c   : > { %2103 = vsyncadd (%p53_p1), [#allocation12], 4294966784  ;;  %vm517_vm0 = vcmask 261120   ;;  %v513_v0 = vld [vmem:[%s447_s29] sm:$0xff]  ;;  %v2379_v1 = vld [vmem:[%s437_s22] sm:$0xff]  ;;  %v2130_v6 = vmov 32.0  }
  0x5d   : > { %v557_v2 = vsel %vm517_vm0, %v513_v0, 0.0  ;;  %v518_v3 = vsel %vm517_vm0, %v2379_v1, 0.0  ;;  %v514_v4 = vld [vmem:[%s447_s29 + $0x8] sm:$0xff]  ;;  %1836 = vrcp.f32 %v2130_v6  ;;  %v2407_v30 = vld [vmem:[#allocation8 + $0x10] sm:$0xff]  ;;  %v2419_v34 = vld [vmem:[#allocation8] sm:$0xff]  ;;  %vm698_vm11 = vcmask 64512  }
  0x5e   : > { %558 = vadd.xlane.f32.xlu0 %v557_v2  ;;  %519 = vadd.xlane.f32.xlu1 %v518_v3  ;;  %v560_v5 = vsel %vm517_vm0, %v514_v4, 0.0  ;;  %v2401_v28 = vld [vmem:[#allocation8 + $0x18] sm:$0xff]  ;;  %v2409_v31 = vld [vmem:[#allocation10 + $0x10] sm:$0xff]  ;;  %v2413_v32 = vld [vmem:[#allocation8 + $0x8] sm:$0xff]  ;;  %vm729_vm12 = vcmask 130048   ;;  %s2131_s19 = smov 120  }
  0x5f   : > { %v2403_v29 = vld [vmem:[#allocation10 + $0x18] sm:$0xff]  ;;  %660 = vmatpush.msra.mxu1 %v2401_v28  ;;  %v2415_v33 = vld [vmem:[#allocation10 + $0x8] sm:$0xff]  ;;  %v2421_v35 = vld [vmem:[#allocation10] sm:$0xff]  ;;  %s2132_s30 = smov 112   ;;  %s2133_s17 = smov 104  }
  0x60   : > { %687 = vmatpush.msra.mxu2 %v2403_v29  ;;  %v2425_v39 = vld [vmem:[#allocation7 + $0x18] sm:$0xff]  ;;  %v2428_v40 = vld [vmem:[#allocation7 + $0x10] sm:$0xff]  ;;  %v2430_v41 = vld [vmem:[#allocation7 + $0x8] sm:$0xff]  ;;  %s1639_s15 = sshll.u32 %s2218_s24, 3  ;;  %s2668_s29 = sld [smem:[#allocation29_spill]] }
  0x61   : > { %661 = vmatpush.msra.mxu1 %v2407_v30  ;;  %630 = vmatpush.msra.mxu0 %v2425_v39  ;;  %v2433_v44 = vld [vmem:[#allocation7] sm:$0xff]  ;;  %v1831_v57 = vld [vmem:[%s2630_s4] ss:$0 sm:$0xff]  ;;  %s1442_s8 = scalar_lea.hbm %s2637_s11, %s1639_s15  ;;  %s511_s13 = scalar_lea.vmem [#allocation13], %s1591_s14 }
  0x62   : > { %688 = vmatpush.msra.mxu2 %v2409_v31  ;;  %v1832_v60 = vld [vmem:[%s2631_s5] ss:$0 sm:$0xff]  ;;  %s1444_s26 = sshll.u32 %s511_s13, 4  ;;  %s1446_s21 = sshll.u32 %s1442_s8, 4  ;;  %s1445_s26 = int_to_ptr.vmem [resolvable:$true] %s1444_s26  ;;  %s1447_s21 = int_to_ptr.hbm [resolvable:$true] %s1446_s21 }
  0x63   : > { %v1837_v7 = vpop.eup %1836  ;;  %662 = vmatpush.msra.mxu1 %v2413_v32  ;;  %631 = vmatpush.msra.mxu0 %v2428_v40  ;;  %s1432_s24 = scalar_lea.sflag [#allocation4], %s2351_s28  ;;  %s2054_s27 = sshra.s32 %s1447_s21, 4  ;;  %s2055_s27 = int_to_ptr.hbm [resolvable:$true] %s2054_s27 }
  0x64   : > { %v522_v8 = vmul.f32 32.0, %v1837_v7  ;;  %vm526_vm1 = vweird.f32 %v1837_v7  ;;  %689 = vmatpush.msra.mxu2 %v2415_v33  ;;  %s2056_s12 = scalar_lea.hbm %s2055_s27, 8  ;;  %s2060_s14 = scalar_lea.hbm %s2637_s11, 16 }
  0x65   : > { %663 = vmatpush.msra.mxu1 %v2419_v34  ;;  %632 = vmatpush.msra.mxu0 %v2430_v41  ;;  %p2057_p1 = scmp.ne.s32.totalorder %s2055_s27, %s2056_s12  ;;  %p2061_p7 = scmp.lt.s32.totalorder %s2055_s27, %s2637_s11 }
  0x66   : > { %561 = vadd.xlane.f32.xlu0 %v560_v5  ;;  %v523_v9 = vsub.f32 1.0, %v522_v8  ;;  %690 = vmatpush.msra.mxu2 %v2421_v35  ;;  %p2062_p9 = scmp.lt.s32.totalorder %s2060_s14, %s2056_s12 }
  0x67   : > { %633 = vmatpush.msra.mxu0 %v2433_v44  ;;  %p2058_p3 = pnand %p2057_p1, %p2295_p4 }
  0x68   : > { %v524_v10 = vmul.f32 %v1837_v7, %v523_v9  ;;  %p2063_p5 = por %p2062_p9, %p2061_p7 }
  0x69   : > { %p2059_p12 = pneg %p2058_p3 }
  0x6a   : > { %v525_v11 = vadd.f32 %v1837_v7, %v524_v10 }
  0x6b   : > { %p2064_p8 = pnand %p2063_p5, %p2059_p12 }
  0x6c   : > { %v527_v12 = vsel %vm526_vm1, %v1837_v7, %v525_v11 }
  0xd1   : > { %v559_v13 = vpop.xlane.xlu0 %558  ;;  %v520_v17 = vpop.xlane.xlu1 %519 }
  0xd2   : > { %v563_v14 = vmul.f32 %v559_v13, %v527_v12  ;;  %v528_v21 = vmul.f32 %v527_v12, %v520_v17  ;;  %v1834_v17 = vld [vmem:[%s2629_s3] ss:$0 sm:$0xff] }
  0xd4   : > { %v2385_v15 = vsub.f32 %v513_v0, %v563_v14  ;;  %v2395_v24 = vsub.f32 %v2379_v1, %v528_v21  ;;  %v1833_v14 = vld [vmem:[%s2628_s2] ss:$0 sm:$0xff] }
  0xd6   : > { %v567_v16 = vmul.f32 %v2385_v15, %v2385_v15  ;;  %v530_v26 = vmul.f32 %v2395_v24, %v2395_v24 }
  0xd8   : > { %v569_v18 = vsel %vm517_vm0, %v567_v16, 0.0  ;;  %v531_v27 = vsel %vm517_vm0, %v530_v26, 0.0  ;;  %v2473_v26 = vpack.i.bf16 %v2407_v30, %v2401_v28  ;;  %v2492_v28 = vpack.i.bf16 %v2419_v34, %v2413_v32 }
  0xd9   : > { %v562_v19 = vpop.xlane.xlu0 %561  ;;  %570 = vadd.xlane.f32.xlu1 %v569_v18  ;;  %v2498_v30 = vpack.i.bf16 %v2409_v31, %v2403_v29 }
  0xda   : > { %v564_v20 = vmul.f32 %v562_v19, %v527_v12 }
  0xdc   : > { %v2390_v22 = vsub.f32 %v514_v4, %v564_v20 }
  0xde   : > { %v568_v23 = vmul.f32 %v2390_v22, %v2390_v22 }
  0xe0   : > { %v572_v25 = vsel %vm517_vm0, %v568_v23, 0.0 }
  0xe1   : > { %573 = vadd.xlane.f32.xlu2 %v572_v25 }
  0xe9   : > { %532 = vadd.xlane.f32.xlu2 %v531_v27 }
 0x101   : > { %1742 = vrot.lane.b32.xlu2 %v2473_v26, %s2131_s19 }
 0x14c   : > { %v571_v36 = vpop.xlane.xlu1 %570 }
 0x14d   : > { %v575_v37 = vmul.f32 %v571_v36, %v527_v12 }
 0x14f   : > { %v577_v38 = vadd.f32 1e-05, %v575_v37  ;;  %v2480_v37 = vpack.i.bf16 %v2433_v44, %v2430_v41 }
 0x151   : > { %1838 = vrsqrt.f32 %v577_v38  ;;  %vm585_vm3 = vweird.f32 %v577_v38  ;;  %1757 = vrot.lane.b32.xlu2 %v2480_v37, %s2131_s19 }
 0x154   : > { %v574_v42 = vpop.xlane.xlu2 %573 }
 0x155   : > { %v576_v43 = vmul.f32 %v574_v42, %v527_v12 }
 0x157   : > { %v1839_v45 = vpop.eup %1838  ;;  %v578_v46 = vadd.f32 1e-05, %v576_v43 }
 0x158   : > { %v580_v47 = vmul.f32 %v1839_v45, %v577_v38  ;;  %vm586_vm2 = vweird.f32 %v1839_v45  ;;  %v2486_v38 = vpack.i.bf16 %v2421_v35, %v2415_v33 }
 0x159   : > { %1840 = vrsqrt.f32 %v578_v46  ;;  %vm587_vm4 = vmor %vm585_vm3, %vm586_vm2  ;;  %vm595_vm6 = vweird.f32 %v578_v46 }
 0x15a   : > { %v581_v48 = vmul.f32 %v1839_v45, %v580_v47  ;;  %1767 = vrot.lane.b32.xlu2 %v2486_v38, %s2131_s19  ;;  %v2507_v47 = vpack.i.bf16 %v2428_v40, %v2425_v39 }
 0x15c   : > { %v582_v49 = vmul.f32 0.5, %v581_v48  ;;  %v533_v50 = vpop.xlane.xlu2 %532 }
 0x15d   : > { %v534_v51 = vmul.f32 %v533_v50, %v527_v12 }
 0x15e   : > { %v583_v52 = vsub.f32 1.5, %v582_v49 }
 0x15f   : > { %v1841_v53 = vpop.eup %1840  ;;  %v535_v54 = vadd.f32 1e-05, %v534_v51 }
 0x160   : > { %v584_v55 = vmul.f32 %v1839_v45, %v583_v52  ;;  %v590_v56 = vmul.f32 %v1841_v53, %v578_v46  ;;  %vm596_vm5 = vweird.f32 %v1841_v53 }
 0x161   : > { %1842 = vrsqrt.f32 %v535_v54  ;;  %vm597_vm7 = vmor %vm595_vm6, %vm596_vm5  ;;  %vm542_vm9 = vweird.f32 %v535_v54 }
 0x162   : > { %v588_v58 = vsel %vm587_vm4, %v1839_v45, %v584_v55  ;;  %v591_v59 = vmul.f32 %v1841_v53, %v590_v56  ;;  %1782 = vrot.lane.b32.xlu2 %v2507_v47, %s2132_s30 }
 0x163   : > { %v599_v61 = vmul.f32 %v588_v58, %v2385_v15 }
 0x164   : > { %v592_v62 = vmul.f32 0.5, %v591_v59  ;;  %v1743_v41 = vpop.permute.xlu2 %1742 }
 0x165   : > { %v604_v63 = vmul.f32 %v1831_v57, %v599_v61  ;;  %v1745_v33 = vunpack.i.h.bf16 %v1743_v41  ;;  %v1744_v35 = vunpack.i.l.bf16 %v1743_v41 }
 0x166   : > { %v593_v0 = vsub.f32 1.5, %v592_v62 }
 0x167   : > { %v1843_v2 = vpop.eup %1842  ;;  %v2444_v3 = vadd.f32 %v1832_v60, %v604_v63 }
 0x168   : > { %v594_v4 = vmul.f32 %v1841_v53, %v593_v0  ;;  %v537_v5 = vmul.f32 %v1843_v2, %v535_v54  ;;  %vm543_vm8 = vweird.f32 %v1843_v2 }
 0x169   : > { %1599 = vmatmul.msk.f32.vlgmr.msra.gmra.mxu1 %vm517_vm0, %v2444_v3  ;;  %1601 = vmatmul.msk.f32.vlgmr.msra.gmra.mxu2 %vm517_vm0, %v2444_v3  ;;  %vm544_vm10 = vmor %vm542_vm9, %vm543_vm8 }
 0x16a   : > { %v598_v6 = vsel %vm597_vm7, %v1841_v53, %v594_v4  ;;  %v538_v7 = vmul.f32 %v1843_v2, %v537_v5 }
 0x16b   : > { %v600_v8 = vmul.f32 %v598_v6, %v2390_v22 }
 0x16c   : > { %v539_v9 = vmul.f32 0.5, %v538_v7 }
 0x16d   : > { %v605_v10 = vmul.f32 %v1831_v57, %v600_v8 }
 0x16e   : > { %v540_v11 = vsub.f32 1.5, %v539_v9 }
 0x16f   : > { %v2451_v12 = vadd.f32 %v1832_v60, %v605_v10 }
 0x170   : > { %v541_v13 = vmul.f32 %v1843_v2, %v540_v11 }
 0x171   : > { %1600 = vmatmul.msk.f32.gmra.mxu1 %vm517_vm0, %v2451_v12  ;;  %1602 = vmatmul.msk.f32.gmra.mxu2 %vm517_vm0, %v2451_v12 }
 0x172   : > { %v545_v15 = vsel %vm544_vm10, %v1843_v2, %v541_v13 }
 0x173   : > { %v546_v16 = vmul.f32 %v545_v15, %v2395_v24 }
 0x175   : > { %v550_v18 = vmul.f32 %v1833_v14, %v546_v16 }
 0x177   : > { %v2464_v19 = vadd.f32 %v1834_v17, %v550_v18 }
 0x179   : > { %1598 = vmatmul.msk.f32.vlgmr.msra.gmra.mxu0 %vm517_vm0, %v2464_v19 }
 0x1ab   : > { %v1758_v29 = vpop.permute.xlu2 %1757 }
 0x1ac   : > { %v1759_v8 = vunpack.i.l.bf16 %v1758_v29  ;;  %v1760_v9 = vunpack.i.h.bf16 %v1758_v29 }
 0x1b4   : > { %v1768_v49 = vpop.permute.xlu2 %1767 }
 0x1b5   : > { %v1769_v52 = vunpack.i.l.bf16 %v1768_v49  ;;  %v1770_v53 = vunpack.i.h.bf16 %v1768_v49 }
 0x1bc   : > { %v1783_v60 = vpop.permute.xlu2 %1782 }
 0x1bd   : > { %v1784_v0 = vunpack.i.l.bf16 %v1783_v60  ;;  %v1785_v4 = vunpack.i.h.bf16 %v1783_v60  ;;  %v969_v60 = vld [vmem:[#allocation11 + $0x8] sm:$0xff] }
 0x1e6   : > { %v665_v20 = vpop.f32.mrf.mxu1 }
 0x1ec   : > { %v692_v21 = vpop.f32.mrf.mxu2 }
 0x1ee   : > { %v668_v22 = vpop.f32.mrf.mxu1 }
 0x1ef   : > { %1603 = vmatpush.xpose.msk.msra.mxu3 %vm698_vm11, %v668_v22 }
 0x1f3   : > { %1604 = vmatpush.xpose.msk.msra.mxu3 %vm698_vm11, %v665_v20 }
 0x1f4   : > { %v695_v23 = vpop.f32.mrf.mxu2 }
 0x1f5   : > { %771 = vmatpush.msrb.mxu0 %v695_v23 }
 0x1f6   : > { %v635_v24 = vpop.f32.mrf.mxu0 }
 0x1f7   : > { %1605 = vmatmul.msk.f32.vlgmr.msra.gmra.mxu3 %vm698_vm11, %v635_v24  ;;  %772 = vmatpush.msrb.mxu0 %v692_v21 }
 0x1f9   : > { %842 = vmatpush.msra.mxu0 %v1744_v35 }
 0x1fb   : > { %843 = vmatpush.msra.mxu0 %v1745_v33 }
 0x27a   : > { %v725_v25 = vpop.f32.mrf.mxu3 }
 0x27b   : > { %v728_v27 = vmul.f32 0.35355338, %v725_v25 }
 0x27d   : > { %v730_v36 = vsel %vm729_vm12, %v728_v27, -inf }
 0x27e   : > { %731 = vmax.xlane.f32.xlu0 %v730_v36 }
 0x292   : > { %1747 = vrot.lane.b32.xlu0 %v2492_v28, %s2131_s19 }
 0x29a   : > { %1762 = vrot.lane.b32.xlu0 %v2498_v30, %s2131_s19 }
 0x2a2   : > { %1777 = vrot.lane.b32.xlu0 %v2492_v28, %s2132_s30 }
 0x2f1   : > { %v732_v42 = vpop.xlane.xlu0 %731 }
 0x2f2   : > { %v733_v43 = vsub.f32 %v728_v27, %v732_v42 }
 0x2f4   : > { %v734_v44 = vmul.f32 1.442695, %v733_v43 }
 0x2f6   : > { %1844 = vpow2.f32 %v734_v44 }
 0x2fc   : > { %v1845_v32 = vpop.eup %1844 }
 0x2fd   : > { %v736_v34 = vsel %vm729_vm12, %v1845_v32, 0.0 }
 0x2fe   : > { %737 = vadd.xlane.f32.xlu1 %v736_v34  ;;  %v777_v34 = vld [vmem:[#allocation11] sm:$0xff] }
 0x304   : > { %v1748_v31 = vpop.permute.xlu0 %1747 }
 0x305   : > { %v1750_v45 = vunpack.i.h.bf16 %v1748_v31  ;;  %v1749_v46 = vunpack.i.l.bf16 %v1748_v31 }
 0x307   : > { %844 = vmatpush.msra.mxu0 %v1749_v46 }
 0x309   : > { %845 = vmatpush.msra.mxu0 %v1750_v45 }
 0x30c   : > { %v1763_v48 = vpop.permute.xlu0 %1762 }
 0x30d   : > { %v1764_v50 = vunpack.i.l.bf16 %v1763_v48  ;;  %v1765_v51 = vunpack.i.h.bf16 %v1763_v48 }
 0x30f   : > { %881 = vmatpush.msrb.mxu1 %v1764_v50 }
 0x311   : > { %882 = vmatpush.msrb.mxu1 %v1765_v51 }
 0x313   : > { %883 = vmatpush.msrb.mxu1 %v1769_v52 }
 0x314   : > { %v1778_v11 = vpop.permute.xlu0 %1777 }
 0x315   : > { %884 = vmatpush.msrb.mxu1 %v1770_v53  ;;  %v1779_v16 = vunpack.i.l.bf16 %v1778_v11  ;;  %v1780_v17 = vunpack.i.h.bf16 %v1778_v11 }
 0x316   : > { %1610 = vmatmul.msk.f32.vlgmr.msrb.gmra.mxu1 %vm517_vm0, %v2444_v3 }
 0x317   : > { %1752 = vrot.lane.b32.xlu1 %v2507_v47, %s2131_s19 }
 0x31e   : > { %1611 = vmatmul.msk.f32.gmra.mxu1 %vm517_vm0, %v2451_v12 }
 0x31f   : > { %1772 = vrot.lane.b32.xlu1 %v2473_v26, %s2132_s30 }
 0x327   : > { %1787 = vrot.lane.b32.xlu1 %v2480_v37, %s2132_s30 }
 0x32f   : > { %1792 = vrot.lane.b32.xlu1 %v2498_v30, %s2132_s30 }
 0x337   : > { %1797 = vrot.lane.b32.xlu1 %v2486_v38, %s2132_s30 }
 0x371   : > { %v738_v39 = vpop.xlane.xlu1 %737 }
 0x372   : > { %1846 = vrcp.f32 %v738_v39  ;;  %v750_v56 = vand.u32 2147483648, %v738_v39  ;;  %v748_v58 = vand.u32 2147483647, %v738_v39  ;;  %vm744_vm14 = vweird.f32 %v738_v39 }
 0x374   : > { %v751_v61 = vor.u32 1.1754944e-38, %v750_v56  ;;  %vm749_vm1 = vcmp.eq.f32.partialorder %v748_v58, 8.507059e+37 }
 0x378   : > { %v1847_v40 = vpop.eup %1846 }
 0x379   : > { %v740_v54 = vmul.f32 %v1847_v40, %v738_v39  ;;  %vm745_vm13 = vweird.f32 %v1847_v40 }
 0x37a   : > { %vm746_vm15 = vmor %vm744_vm14, %vm745_vm13 }
 0x37b   : > { %v741_v55 = vsub.f32 1.0, %v740_v54 }
 0x37d   : > { %v742_v57 = vmul.f32 %v1847_v40, %v741_v55 }
 0x37f   : > { %v743_v59 = vadd.f32 %v1847_v40, %v742_v57 }
 0x381   : > { %v747_v62 = vsel %vm746_vm15, %v1847_v40, %v743_v59 }
 0x382   : > { %v752_v63 = vsel %vm749_vm1, %v751_v61, %v747_v62 }
 0x383   : > { %v753_v2 = vmul.f32 %v1845_v32, %v752_v63 }
 0x385   : > { %1606 = vmatmul.msk.f32.vlgmr.msrb.gmra.mxu0 %vm729_vm12, %v753_v2 }
 0x386   : > { %1040 = vmatpush.msrb.mxu0 %v1784_v0 }
 0x388   : > { %1041 = vmatpush.msrb.mxu0 %v1785_v4 }
 0x389   : > { %v1753_v5 = vpop.permute.xlu1 %1752 }
 0x38a   : > { %v1754_v6 = vunpack.i.l.bf16 %v1753_v5  ;;  %v1755_v7 = vunpack.i.h.bf16 %v1753_v5 }
 0x38c   : > { %806 = vmatpush.msrb.mxu3 %v1754_v6 }
 0x38d   : > { %1608 = vmatmul.msk.f32.vlgmr.msra.gmra.mxu0 %vm517_vm0, %v2444_v3 }
 0x38e   : > { %807 = vmatpush.msrb.mxu3 %v1755_v7 }
 0x390   : > { %808 = vmatpush.msrb.mxu3 %v1759_v8 }
 0x391   : > { %v1773_v10 = vpop.permute.xlu1 %1772 }
 0x392   : > { %v1775_v13 = vunpack.i.h.bf16 %v1773_v10  ;;  %v1774_v14 = vunpack.i.l.bf16 %v1773_v10  ;;  %809 = vmatpush.msrb.mxu3 %v1760_v9 }
 0x393   : > { %1607 = vmatmul.msk.f32.vlgmr.msrb.gmra.mxu3 %vm517_vm0, %v2464_v19  ;;  %v886_v15 = vpop.f32.mrf.mxu1 }
 0x394   : > { %1072 = vmatpush.msra.mxu1 %v1774_v14 }
 0x395   : > { %1609 = vmatmul.msk.f32.gmra.mxu0 %vm517_vm0, %v2451_v12 }
 0x396   : > { %1073 = vmatpush.msra.mxu1 %v1775_v13 }
 0x398   : > { %1074 = vmatpush.msra.mxu1 %v1779_v16 }
 0x399   : > { %v1788_v18 = vpop.permute.xlu1 %1787 }
 0x39a   : > { %v1790_v20 = vunpack.i.h.bf16 %v1788_v18  ;;  %v1789_v21 = vunpack.i.l.bf16 %v1788_v18  ;;  %1075 = vmatpush.msra.mxu1 %v1780_v17 }
 0x39b   : > { %v889_v22 = vpop.f32.mrf.mxu1  ;;  %1619 = vmatmul.msk.f32.vlgmr.msra.gmra.mxu1 %vm517_vm0, %v2444_v3 }
 0x39c   : > { %963 = vmatpush.msra.mxu3 %v889_v22  ;;  %1042 = vmatpush.msrb.mxu0 %v1789_v21 }
 0x39e   : > { %964 = vmatpush.msra.mxu3 %v886_v15  ;;  %1043 = vmatpush.msrb.mxu0 %v1790_v20 }
 0x39f   : > { %1618 = vmatmul.msk.f32.vlgmr.msrb.gmra.mxu0 %vm517_vm0, %v2464_v19 }
 0x3a0   : > { %1011 = vmatpush.msrb.mxu3 %v777_v34 }
 0x3a1   : > { %v1793_v57 = vpop.permute.xlu1 %1792 }
 0x3a2   : > { %v1794_v58 = vunpack.i.l.bf16 %v1793_v57  ;;  %v1795_v59 = vunpack.i.h.bf16 %v1793_v57 }
 0x3a3   : > { %1620 = vmatmul.msk.f32.gmra.mxu1 %vm517_vm0, %v2451_v12 }
 0x3a9   : > { %v1798_v61 = vpop.permute.xlu1 %1797 }
 0x3aa   : > { %v1799_v62 = vunpack.i.l.bf16 %v1798_v61  ;;  %v1800_v63 = vunpack.i.h.bf16 %v1798_v61 }
 0x402   : > { %v774_v23 = vpop.f32.mrf.mxu0 }
 0x40a   : > { %v847_v24 = vpop.f32.mrf.mxu0 }
 0x412   : > { %v850_v25 = vpop.f32.mrf.mxu0 }
 0x413   : > { %1612 = vmatpush.xpose.msk.msrb.mxu2 %vm698_vm11, %v850_v25 }
 0x416   : > { %v811_v27 = vpop.f32.mrf.mxu3 }
 0x417   : > { %1613 = vmatpush.xpose.msk.msrb.mxu2 %vm698_vm11, %v847_v24 }
 0x418   : > { %v1077_v46 = vpop.f32.mrf.mxu1 }
 0x41a   : > { %1614 = vmatmul.msk.f32.vlgmr.msrb.gmra.mxu2 %vm698_vm11, %v811_v27 }
 0x41b   : > { %988 = vmatpush.msra.mxu2 %v969_v60 }
 0x41c   : > { %v1045_v56 = vpop.f32.mrf.mxu0 }
 0x41d   : > { %1107 = vmatpush.msrb.mxu2 %v1794_v58 }
 0x41f   : > { %1108 = vmatpush.msrb.mxu2 %v1795_v59 }
 0x420   : > { %v1080_v55 = vpop.f32.mrf.mxu1 }
 0x421   : > { %1109 = vmatpush.msrb.mxu2 %v1799_v62 }
 0x423   : > { %1110 = vmatpush.msrb.mxu2 %v1800_v63 }
 0x49d   : > { %v918_v36 = vpop.f32.mrf.mxu2 }
 0x49e   : > { %v921_v41 = vmul.f32 0.35355338, %v918_v36 }
 0x4a0   : > { %v922_v33 = vsel %vm729_vm12, %v921_v41, -inf }
 0x4a1   : > { %923 = vmax.xlane.f32.xlu0 %v922_v33 }
 0x514   : > { %v924_v35 = vpop.xlane.xlu0 %923 }
 0x515   : > { %v925_v42 = vsub.f32 %v921_v41, %v924_v35 }
 0x517   : > { %v926_v43 = vmul.f32 1.442695, %v925_v42 }
 0x519   : > { %1848 = vpow2.f32 %v926_v43 }
 0x51f   : > { %v1849_v44 = vpop.eup %1848 }
 0x520   : > { %v928_v32 = vsel %vm729_vm12, %v1849_v44, 0.0 }
 0x521   : > { %929 = vadd.xlane.f32.xlu2 %v928_v32 }
 0x539   : > { %1802 = vrot.lane.b32.xlu2 %v2473_v26, %s2133_s17 }
 0x541   : > { %1817 = vrot.lane.b32.xlu2 %v2480_v37, %s2133_s17 }
 0x549   : > { %1827 = vrot.lane.b32.xlu2 %v2486_v38, %s2133_s17 }
 0x594   : > { %v930_v29 = vpop.xlane.xlu2 %929 }
 0x595   : > { %1850 = vrcp.f32 %v930_v29  ;;  %v942_v49 = vand.u32 2147483648, %v930_v29  ;;  %v940_v51 = vand.u32 2147483647, %v930_v29  ;;  %vm936_vm3 = vweird.f32 %v930_v29 }
 0x597   : > { %v943_v53 = vor.u32 1.1754944e-38, %v942_v49  ;;  %vm941_vm5 = vcmp.eq.f32.partialorder %v940_v51, 8.507059e+37  ;;  %v1195_v49 = vld [vmem:[#allocation11 + $0x10] sm:$0xff] }
 0x59b   : > { %v1851_v31 = vpop.eup %1850 }
 0x59c   : > { %v932_v45 = vmul.f32 %v1851_v31, %v930_v29  ;;  %vm937_vm2 = vweird.f32 %v1851_v31 }
 0x59d   : > { %vm938_vm4 = vmor %vm936_vm3, %vm937_vm2 }
 0x59e   : > { %v933_v48 = vsub.f32 1.0, %v932_v45 }
 0x5a0   : > { %v934_v50 = vmul.f32 %v1851_v31, %v933_v48 }
 0x5a2   : > { %v935_v52 = vadd.f32 %v1851_v31, %v934_v50 }
 0x5a4   : > { %v939_v39 = vsel %vm938_vm4, %v1851_v31, %v935_v52 }
 0x5a5   : > { %v944_v40 = vsel %vm941_vm5, %v943_v53, %v939_v39 }
 0x5a6   : > { %v945_v54 = vmul.f32 %v1849_v44, %v944_v40 }
 0x5a8   : > { %1615 = vmatmul.msk.f32.vlgmr.msra.gmra.mxu3 %vm729_vm12, %v945_v54 }
 0x5a9   : > { %1623 = vmatpush.xpose.msk.msra.mxu3 %vm698_vm11, %v1080_v55 }
 0x5ad   : > { %1624 = vmatpush.xpose.msk.msra.mxu3 %vm698_vm11, %v1077_v46 }
 0x5b0   : > { %1617 = vmatmul.msk.f32.vlgmr.msrb.gmra.mxu3 %vm698_vm11, %v774_v23 }
 0x5b1   : > { %1214 = vmatpush.msrb.mxu3 %v1195_v49 }
 0x5b8   : > { %1625 = vmatmul.msk.f32.vlgmr.msra.gmra.mxu3 %vm698_vm11, %v1045_v56 }
 0x62b   : > { %v966_v0 = vpop.f32.mrf.mxu3 }
 0x62c   : > { %1616 = vmatmul.msk.f32.vlgmr.msra.gmra.mxu2 %vm698_vm11, %v966_v0 }
 0x633   : > { %v2549_v2 = vpop.f32.mrf.mxu3 }
 0x634   : > { %1621 = vmatmul.msk.f32.vlgmr.msrb.gmra.mxu2 %vm517_vm0, %v2444_v3 }
 0x63b   : > { %v1144_v4 = vpop.f32.mrf.mxu3 }
 0x63c   : > { %v1147_v5 = vmul.f32 0.35355338, %v1144_v4  ;;  %1622 = vmatmul.msk.f32.gmra.mxu2 %vm517_vm0, %v2451_v12 }
 0x63e   : > { %v1148_v6 = vsel %vm729_vm12, %v1147_v5, -inf }
 0x63f   : > { %1149 = vmax.xlane.f32.xlu1 %v1148_v6 }
 0x658   : > { %1812 = vrot.lane.b32.xlu1 %v2507_v47, %s2133_s17  ;;  %v1803_v47 = vpop.permute.xlu2 %1802 }
 0x659   : > { %v1804_v16 = vunpack.i.l.bf16 %v1803_v47  ;;  %v1805_v17 = vunpack.i.h.bf16 %v1803_v47 }
 0x65b   : > { %1276 = vmatpush.msrb.mxu1 %v1804_v16  ;;  %v1835_v16 = vld [vmem:[%s2668_s29] ss:$0 sm:$0xff] }
 0x65d   : > { %1277 = vmatpush.msrb.mxu1 %v1805_v17 }
 0x660   : > { %v1818_v21 = vpop.permute.xlu2 %1817 }
 0x661   : > { %v1820_v22 = vunpack.i.h.bf16 %v1818_v21  ;;  %v1819_v23 = vunpack.i.l.bf16 %v1818_v21 }
 0x668   : > { %v1828_v29 = vpop.permute.xlu2 %1827 }
 0x669   : > { %v1829_v46 = vunpack.i.l.bf16 %v1828_v29  ;;  %v1830_v48 = vunpack.i.h.bf16 %v1828_v29 }
 0x6af   : > { %v2557_v7 = vpop.f32.mrf.mxu2 }
 0x6b2   : > { %v1150_v8 = vpop.xlane.xlu1 %1149 }
 0x6b3   : > { %v1151_v9 = vsub.f32 %v1147_v5, %v1150_v8 }
 0x6b5   : > { %v1152_v10 = vmul.f32 1.442695, %v1151_v9 }
 0x6b7   : > { %1852 = vpow2.f32 %v1152_v10  ;;  %v1112_v11 = vpop.f32.mrf.mxu2 }
 0x6bd   : > { %v1853_v13 = vpop.eup %1852 }
 0x6be   : > { %v1154_v14 = vsel %vm729_vm12, %v1853_v13, 0.0 }
 0x6bf   : > { %1155 = vadd.xlane.f32.xlu0 %v1154_v14  ;;  %v1115_v15 = vpop.f32.mrf.mxu2 }
 0x6c0   : > { %1189 = vmatpush.msra.mxu0 %v1115_v15 }
 0x6c2   : > { %1190 = vmatpush.msra.mxu0 %v1112_v11 }
 0x6ca   : > { %v1813_v18 = vpop.permute.xlu1 %1812 }
 0x6cb   : > { %v1815_v26 = vunpack.i.h.bf16 %v1813_v18  ;;  %v1814_v20 = vunpack.i.l.bf16 %v1813_v18 }
 0x6cd   : > { %1244 = vmatpush.msrb.mxu0 %v1814_v20 }
 0x6cf   : > { %1245 = vmatpush.msrb.mxu0 %v1815_v26 }
 0x6d1   : > { %1246 = vmatpush.msrb.mxu0 %v1819_v23 }
 0x6d3   : > { %1807 = vrot.lane.b32.xlu0 %v2492_v28, %s2133_s17  ;;  %1247 = vmatpush.msrb.mxu0 %v1820_v22 }
 0x6db   : > { %1822 = vrot.lane.b32.xlu0 %v2498_v30, %s2133_s17 }
 0x732   : > { %v1156_v37 = vpop.xlane.xlu0 %1155 }
 0x733   : > { %1854 = vrcp.f32 %v1156_v37  ;;  %v1168_v24 = vand.u32 2147483648, %v1156_v37  ;;  %v1166_v27 = vand.u32 2147483647, %v1156_v37  ;;  %vm1162_vm7 = vweird.f32 %v1156_v37 }
 0x735   : > { %v1169_v41 = vor.u32 1.1754944e-38, %v1168_v24  ;;  %vm1167_vm9 = vcmp.eq.f32.partialorder %v1166_v27, 8.507059e+37 }
 0x739   : > { %v1855_v38 = vpop.eup %1854 }
 0x73a   : > { %v1158_v28 = vmul.f32 %v1855_v38, %v1156_v37  ;;  %vm1163_vm6 = vweird.f32 %v1855_v38 }
 0x73b   : > { %vm1164_vm8 = vmor %vm1162_vm7, %vm1163_vm6 }
 0x73c   : > { %v1159_v30 = vsub.f32 1.0, %v1158_v28 }
 0x73e   : > { %v1160_v25 = vmul.f32 %v1855_v38, %v1159_v30 }
 0x740   : > { %v1161_v36 = vadd.f32 %v1855_v38, %v1160_v25 }
 0x742   : > { %v1165_v33 = vsel %vm1164_vm8, %v1855_v38, %v1161_v36 }
 0x743   : > { %v1170_v35 = vsel %vm1167_vm9, %v1169_v41, %v1165_v33 }
 0x744   : > { %v1171_v42 = vmul.f32 %v1853_v13, %v1170_v35  ;;  %v1399_v13 = vld [vmem:[#allocation11 + $0x18] sm:$0xff] }
 0x745   : > { %v1808_v43 = vpop.permute.xlu0 %1807 }
 0x746   : > { %v1809_v44 = vunpack.i.l.bf16 %v1808_v43  ;;  %1626 = vmatmul.msk.f32.vlgmr.msra.gmra.mxu0 %vm729_vm12, %v1171_v42  ;;  %v1810_v32 = vunpack.i.h.bf16 %v1808_v43 }
 0x748   : > { %1278 = vmatpush.msrb.mxu1 %v1809_v44 }
 0x74a   : > { %1279 = vmatpush.msrb.mxu1 %v1810_v32 }
 0x74b   : > { %1629 = vmatmul.msk.f32.vlgmr.msrb.gmra.mxu1 %vm517_vm0, %v2444_v3 }
 0x74d   : > { %v1823_v34 = vpop.permute.xlu0 %1822 }
 0x74e   : > { %v1825_v31 = vunpack.i.h.bf16 %v1823_v34  ;;  %v1824_v45 = vunpack.i.l.bf16 %v1823_v34  ;;  %1628 = vmatmul.msk.f32.vlgmr.msrb.gmra.mxu0 %vm517_vm0, %v2464_v19 }
 0x750   : > { %1311 = vmatpush.msra.mxu2 %v1824_v45 }
 0x752   : > { %1312 = vmatpush.msra.mxu2 %v1825_v31 }
 0x753   : > { %1630 = vmatmul.msk.f32.gmra.mxu1 %vm517_vm0, %v2451_v12 }
 0x754   : > { %1313 = vmatpush.msra.mxu2 %v1829_v46 }
 0x756   : > { %1314 = vmatpush.msra.mxu2 %v1830_v48 }
 0x757   : > { %1631 = vmatmul.msk.f32.vlgmr.msra.gmra.mxu2 %vm517_vm0, %v2444_v3  ;;  %v1014_v3 = vadd.f32 %v2549_v2, %v2557_v7 }
 0x75f   : > { %1632 = vmatmul.msk.f32.gmra.mxu2 %vm517_vm0, %v2451_v12 }
 0x7c3   : > { %v1192_v50 = vpop.f32.mrf.mxu0 }
 0x7c4   : > { %1627 = vmatmul.msk.f32.vlgmr.msrb.gmra.mxu3 %vm698_vm11, %v1192_v50 }
 0x7c8   : > { %v1281_v19 = vpop.f32.mrf.mxu1 }
 0x7cb   : > { %v1249_v52 = vpop.f32.mrf.mxu0 }
 0x7d0   : > { %v1284_v51 = vpop.f32.mrf.mxu1 }
 0x7d1   : > { %1633 = vmatpush.xpose.msk.msra.mxu3 %vm698_vm11, %v1284_v51 }
 0x7d5   : > { %1634 = vmatpush.xpose.msk.msra.mxu3 %vm698_vm11, %v1281_v19 }
 0x7d8   : > { %1635 = vmatmul.msk.f32.vlgmr.msra.gmra.mxu3 %vm698_vm11, %v1249_v52 }
 0x7d9   : > { %1418 = vmatpush.msrb.mxu3 %v1399_v13 }
 0x7da   : > { %v1316_v53 = vpop.f32.mrf.mxu2 }
 0x7e2   : > { %v1319_v39 = vpop.f32.mrf.mxu2 }
 0x7e3   : > { %1393 = vmatpush.msra.mxu0 %v1319_v39 }
 0x7e5   : > { %1394 = vmatpush.msra.mxu0 %v1316_v53 }
 0x847   : > { %v1216_v12 = vpop.f32.mrf.mxu3 }
 0x848   : > { %v1219_v40 = vadd.f32 %v1216_v12, %v1014_v3 }
 0x85b   : > { %v1348_v54 = vpop.f32.mrf.mxu3 }
 0x85c   : > { %v1351_v55 = vmul.f32 0.35355338, %v1348_v54 }
 0x85e   : > { %v1352_v56 = vsel %vm729_vm12, %v1351_v55, -inf }
 0x85f   : > { %1353 = vmax.xlane.f32.xlu0 %v1352_v56 }
 0x8d2   : > { %v1354_v57 = vpop.xlane.xlu0 %1353 }
 0x8d3   : > { %v1355_v58 = vsub.f32 %v1351_v55, %v1354_v57 }
 0x8d5   : > { %v1356_v59 = vmul.f32 1.442695, %v1355_v58 }
 0x8d7   : > { %1856 = vpow2.f32 %v1356_v59 }
 0x8dd   : > { %v1857_v60 = vpop.eup %1856 }
 0x8de   : > { %v1358_v61 = vsel %vm729_vm12, %v1857_v60, 0.0 }
 0x8df   : > { %1359 = vadd.xlane.f32.xlu2 %v1358_v61 }
 0x952   : > { %v1360_v62 = vpop.xlane.xlu2 %1359 }
 0x953   : > { %1858 = vrcp.f32 %v1360_v62  ;;  %v1372_v4 = vand.u32 2147483648, %v1360_v62  ;;  %v1370_v6 = vand.u32 2147483647, %v1360_v62  ;;  %vm1366_vm13 = vweird.f32 %v1360_v62 }
 0x955   : > { %v1373_v8 = vor.u32 1.1754944e-38, %v1372_v4  ;;  %vm1371_vm15 = vcmp.eq.f32.partialorder %v1370_v6, 8.507059e+37 }
 0x959   : > { %v1859_v63 = vpop.eup %1858 }
 0x95a   : > { %v1362_v0 = vmul.f32 %v1859_v63, %v1360_v62  ;;  %vm1367_vm10 = vweird.f32 %v1859_v63 }
 0x95b   : > { %vm1368_vm14 = vmor %vm1366_vm13, %vm1367_vm10 }
 0x95c   : > { %v1363_v2 = vsub.f32 1.0, %v1362_v0 }
 0x95e   : > { %v1364_v5 = vmul.f32 %v1859_v63, %v1363_v2 }
 0x960   : > { %v1365_v7 = vadd.f32 %v1859_v63, %v1364_v5 }
 0x962   : > { %v1369_v9 = vsel %vm1368_vm14, %v1859_v63, %v1365_v7 }
 0x963   : > { %v1374_v10 = vsel %vm1371_vm15, %v1373_v8, %v1369_v9 }
 0x964   : > { %v1375_v11 = vmul.f32 %v1857_v60, %v1374_v10 }
 0x966   : > { %1636 = vmatmul.msk.f32.vlgmr.msra.gmra.mxu0 %vm729_vm12, %v1375_v11 }
 0x9e3   : > { %v1396_v14 = vpop.f32.mrf.mxu0 }
 0x9e4   : > { %1637 = vmatmul.msk.f32.vlgmr.msrb.gmra.mxu3 %vm698_vm11, %v1396_v14 }
 0xa67   : > { %v1420_v15 = vpop.f32.mrf.mxu3 }
 0xa68   : > { %v1423_v47 = vadd.f32 %v1420_v15, %v1219_v40 }
 0xa6a   : > { %v1424_v17 = vadd.f32 %v1423_v47, %v2379_v1 }
 0xa6c   : > { %v1429_v18 = vadd.f32 %v1835_v16, %v1424_v17 }
 0xa6e   : > { %1430 = vst.msk [vmem:[%s511_s13] sm:$0xff] %vm517_vm0, %v1429_v18 }
 0xa6f   : > { %2067 = shalt.err (!%p2064_p8)
}
 0xa70   : > { %1663 = dma.vmem_to_hbm [thread:$0]  (%p2295_p4), %s1445_s26, 128, %s1447_s21, %s1432_s24  }
 0xa71 PF: > { %s2669_s28 = sld [smem:[#allocation20_spill]]  ;;  %p2671_p10 = scmp.ge.s32.totalorder %s2122_s20, 2 }
 0xa73   : > { %p1686_p13 = pnand %p2671_p10, %p2299_p6 }
 0xa75   : > { %p1687_p11 = pneg %p1686_p13 }
 0xa77   : > { %s1458_s17 = sand.u32 1, %s2669_s28  }
 0xa78   : > { %s1459_s15 = scalar_lea.sflag [#allocation4], %s1458_s17 }
 0xa79   : > { %2105 = dma.done.wait (%p1687_p11), %s1459_s15, 128  }
 0xa7a   : > { %2107 = vsyncadd (%p1687_p11), %s1459_s15, 4294967168  ;;  %s2672_s20 = sld [smem:[#allocation22_spill]]  ;;  %s2675_s17 = smov %s2114_s18 }
 0xa7b   : > { %s2673_s16 = sld [smem:[#allocation21_spill]] }
 0xa7c   : > { %s2674_s19 = sld [smem:[#allocation23_spill]] }
 0xa80   : > { %p29_p0 = scmp.ge.s32.totalorder %s2672_s20, 4  }
 0xa81   : > { %s2676_s18 = smov %s2673_s16 }
 0xa82   :  { %31 = sbr.rel (!%p29_p0) target bundleno = 15 (0xf), region = 138 }
 0xa87   :  { %1465 = vsyncpa [#allocation3], 1 }
 0xa88   :  { %1467 = vsyncpa [#allocation3 + $0x1], 1 }
 0xa89   :  { %1468 = vsyncpa [#allocation6], 1 }
 0xa8a   :  { %1470 = vsyncpa [#allocation6 + $0x1], 1 }
 0xa8b   :  { %1471 = vsyncpa [#allocation9], 1 }
 0xa8c   :  { %1472 = vsyncpa [#allocation12], 1 }
 0xa8d   :  { %1473 = vsyncpa [#allocation4], 1 }
 0xa8e   :  { %1475 = vsyncpa [#allocation4 + $0x1], 1 }

</bundles_post_ra>
